<compile_context>
chip_gen: v7x
topology: tpu7x:2x2x1
jax: 0.10.0
libtpu: 0.0.40
codegen_flags: <defaults>
</compile_context>

<pallas_src>
import jax
import jax.numpy as jnp
from jax.experimental import pallas as pl
from jax.experimental.pallas import tpu as pltpu

ALPHA = 0.5   # distillation_alpha
TAU = 3.0     # distillation_tau


def _phys_vmem_bytes():
    """Best-effort physical VMEM query; assume the smallest budget (v7x, 64 MiB) if unknown."""
    try:
        return int(pltpu.get_tpu_info().vmem_capacity_bytes)
    except Exception:
        return 64 << 20


def _footprint_bytes(tile_b, c, in_itemsize):
    # 3 logit streams, double-buffered inputs + generous bound on in-kernel f32 temporaries.
    return 3 * 2 * tile_b * c * in_itemsize + 20 * tile_b * c * 4


def _make_deit_loss_kernel(batch_size: int, tile_b: int):
    inv_tau = 1.0 / TAU
    use_cube = (TAU == 3.0)  # exp(z) == exp(z/3)**3 : trade 2 EUP passes for 4 VPU multiplies

    def kernel(labels_ref, cls_ref, dist_ref, teacher_ref, out_ref):
        pid = pl.program_id(0)

        labels = labels_ref[...]                           # (TB, 1) int32
        cls = cls_ref[...].astype(jnp.float32)             # (TB, C)
        dist = dist_ref[...].astype(jnp.float32)           # (TB, C)
        teacher = teacher_ref[...].astype(jnp.float32)     # (TB, C)

        tb, c = cls.shape
        class_ids = jax.lax.broadcasted_iota(jnp.int32, (tb, c), 1)
        onehot = (class_ids == labels).astype(jnp.float32)

        # Global row validity for the (possibly partial) last tile; applied via select on the
        # per-row partials so garbage (even NaN/Inf) in out-of-range rows never propagates.
        row_ids = pid * tile_b + jax.lax.broadcasted_iota(jnp.int32, (tb, 1), 0)
        row_valid = row_ids < batch_size                   # (TB, 1) bool

        def student_stats(x):
            # One row max reused for both temperatures (max(x/tau) == max(x)/tau).
            m = jnp.max(x, axis=1, keepdims=True)
            z = x - m
            et = jnp.exp(z * inv_tau)                      # exp(z/tau): the only EUP pass
            e1 = et * et * et if use_cube else jnp.exp(z)  # exp(z) via cubing (tau == 3)
            lse1 = jnp.log(jnp.sum(e1, axis=1, keepdims=True))
            lset = jnp.log(jnp.sum(et, axis=1, keepdims=True))
            return z, lse1, lset

        z_cls, lse1_cls, lset_cls = student_stats(cls)
        z_dist, lse1_dist, lset_dist = student_stats(dist)

        # Teacher only needs tau-scaled stats; reuse exp(zt) for the LSE and the (unnormalized)
        # soft targets — the normalization is deferred to a single (TB,1) reciprocal.
        mt = jnp.max(teacher, axis=1, keepdims=True)
        zt_t = (teacher - mt) * inv_tau
        et_t = jnp.exp(zt_t)
        set_t = jnp.sum(et_t, axis=1, keepdims=True)
        lset_t = jnp.log(set_t)
        # approx=True is not worth it here: the op is only (TB,1)-sized and the approximate
        # reciprocal's error is visible in the scalar loss; exact reciprocal is effectively free.
        inv_set_t = pl.reciprocal(set_t)

        zsum = z_cls + z_dist                              # (TB, C), reused by CE and KL

        # Hard CE per row (both heads fused): one (TB,C) multiply + one row reduction.
        ce_row = lse1_cls + lse1_dist - jnp.sum(onehot * zsum, axis=1, keepdims=True)

        # KL per row (both heads fused), using sum_c softmax_t == 1; soft targets and
        # log-softmax arrays are never materialized.
        kl_inner = jnp.sum(et_t * (2.0 * zt_t - zsum * inv_tau), axis=1, keepdims=True) * inv_set_t
        kl_row = kl_inner + lset_cls + lset_dist - 2.0 * lset_t

        zero = jnp.zeros_like(ce_row)
        out_ref[:, 0:1] = jnp.where(row_valid, ce_row, zero)
        out_ref[:, 1:2] = jnp.where(row_valid, kl_row, zero)

    return kernel


def deit_loss(student_outputs, targets, *, tile_b=None):
    """student_outputs = (cls_logits, dist_logits, teacher_logits), each (B, C); targets (B,) int."""
    cls_logits, dist_logits, teacher_logits = student_outputs
    B, C = cls_logits.shape

    if teacher_logits is None:
        # TODO(synk): a dedicated hard-only kernel would skip the teacher DMA + KL math entirely.
        teacher = jnp.zeros((B, C), dtype=cls_logits.dtype)
    else:
        teacher = teacher_logits

    phys_vmem = _phys_vmem_bytes()
    budget = phys_vmem // 2                      # pipelined inputs + temporaries must fit here
    itemsize = jnp.dtype(cls_logits.dtype).itemsize

    if tile_b is None:
        tile_b = 512 if phys_vmem >= (96 << 20) else 256   # v5e/v6e: 128 MiB; v7x: 64 MiB
    tile_b = int(tile_b)
    if tile_b >= B:
        tile_b = B                               # full-dim block is always layout-legal
    else:
        tile_b = max(8, (tile_b // 8) * 8)       # sublane-aligned when the batch is split
    while tile_b > 8 and _footprint_bytes(tile_b, C, itemsize) > budget:
        tile_b = max(8, ((tile_b // 2) // 8) * 8)

    num_tiles = (B + tile_b - 1) // tile_b
    est = _footprint_bytes(tile_b, C, itemsize)
    vmem_limit = int(min(int(phys_vmem * 0.85), max(32 << 20, est + (8 << 20))))

    labels = targets.astype(jnp.int32).reshape(B, 1)
    kernel = _make_deit_loss_kernel(B, tile_b)

    partials = pl.pallas_call(
        kernel,
        out_shape=jax.ShapeDtypeStruct((num_tiles * tile_b, 2), jnp.float32),
        grid=(num_tiles,),
        in_specs=[
            pl.BlockSpec((tile_b, 1), lambda i: (i, 0)),   # labels
            pl.BlockSpec((tile_b, C), lambda i: (i, 0)),   # cls logits (full class axis, no pad)
            pl.BlockSpec((tile_b, C), lambda i: (i, 0)),   # dist logits
            pl.BlockSpec((tile_b, C), lambda i: (i, 0)),   # teacher logits
        ],
        out_specs=pl.BlockSpec((tile_b, 2), lambda i: (i, 0)),
        compiler_params=pltpu.CompilerParams(
            # Disjoint per-tile output blocks and no shared accumulator -> fully parallel grid;
            # on v7x the batch tiles are sharded across the 2 TensorCores.
            dimension_semantics=("parallel",),
            vmem_limit_bytes=vmem_limit,
        ),
    )(labels, cls_logits, dist_logits, teacher)

    ce_sum = jnp.sum(partials[:, 0])
    kl_sum = jnp.sum(partials[:, 1])
    hard = 0.5 * ce_sum / B
    if teacher_logits is None:
        soft = jnp.float32(0.0)
    else:
        soft = 0.5 * (TAU * TAU) * kl_sum / B
    total = (1.0 - ALPHA) * hard + ALPHA * soft
    return {"total_loss": total, "hard_loss": hard, "soft_loss": soft}


def _reference(student_outputs, targets):
    """Pure-JAX reference mirroring the PyTorch forward, for verification."""
    cls_logits, dist_logits, teacher_logits = [x.astype(jnp.float32) for x in student_outputs]
    onehot = jax.nn.one_hot(targets, cls_logits.shape[1], dtype=jnp.float32)

    def ce(logits):
        return -jnp.mean(jnp.sum(onehot * jax.nn.log_softmax(logits, axis=1), axis=1))

    hard = 0.5 * (ce(cls_logits) + ce(dist_logits))
    log_soft_t = jax.nn.log_softmax(teacher_logits / TAU, axis=1)
    soft_t = jnp.exp(log_soft_t)
    B = cls_logits.shape[0]

    def kl(student):
        logp = jax.nn.log_softmax(student / TAU, axis=1)
        return jnp.sum(soft_t * (log_soft_t - logp)) / B

    soft = 0.5 * (kl(cls_logits) * TAU ** 2 + kl(dist_logits) * TAU ** 2)
    total = (1.0 - ALPHA) * hard + ALPHA * soft
    return total, hard, soft


if __name__ == "__main__":
    root_key = jax.random.PRNGKey(0)

    def run_case(B, C, dtype, tile_b, rtol, atol, key):
        k1, k2, k3, k4 = jax.random.split(key, 4)
        cls_logits = jax.random.normal(k1, (B, C), dtype=jnp.float32).astype(dtype)
        dist_logits = jax.random.normal(k2, (B, C), dtype=jnp.float32).astype(dtype)
        teacher_logits = jax.random.normal(k3, (B, C), dtype=jnp.float32).astype(dtype)
        targets = jax.random.randint(k4, (B,), 0, C, dtype=jnp.int32)

        out = deit_loss((cls_logits, dist_logits, teacher_logits), targets, tile_b=tile_b)
        out = jax.tree_util.tree_map(jax.block_until_ready, out)

        ref_total, ref_hard, ref_soft = _reference(
            (cls_logits, dist_logits, teacher_logits), targets)
        assert jnp.allclose(out["total_loss"], ref_total, rtol=rtol, atol=atol), \
            (out["total_loss"], ref_total)
        assert jnp.allclose(out["hard_loss"], ref_hard, rtol=rtol, atol=atol), \
            (out["hard_loss"], ref_hard)
        assert jnp.allclose(out["soft_loss"], ref_soft, rtol=rtol, atol=atol), \
            (out["soft_loss"], ref_soft)

    keys = jax.random.split(root_key, 4)
    # Partial edge tile (20 rows, tile 16) + non-128-multiple class axis, no padding anywhere.
    run_case(B=20, C=1000, dtype=jnp.float32, tile_b=16, rtol=1e-4, atol=5e-5, key=keys[0])
    # Small non-multiple-of-8 batch handled as a single full-batch tile.
    run_case(B=10, C=100, dtype=jnp.float32, tile_b=None, rtol=1e-4, atol=5e-5, key=keys[1])
    # bf16 logits (halved HBM traffic); math is still f32 inside the kernel.
    run_case(B=8, C=128, dtype=jnp.bfloat16, tile_b=None, rtol=1e-4, atol=1e-4, key=keys[2])

    # teacher_logits is None path (hard loss only), mirroring the PyTorch module.
    kk1, kk2, kk3 = jax.random.split(keys[3], 3)
    cls_l = jax.random.normal(kk1, (8, 64), dtype=jnp.float32)
    dist_l = jax.random.normal(kk2, (8, 64), dtype=jnp.float32)
    tgts = jax.random.randint(kk3, (8,), 0, 64, dtype=jnp.int32)
    out = deit_loss((cls_l, dist_l, None), tgts)
    out = jax.tree_util.tree_map(jax.block_until_ready, out)
    _, ref_hard, _ = _reference((cls_l, dist_l, jnp.zeros_like(cls_l)), tgts)
    assert jnp.allclose(out["hard_loss"], ref_hard, rtol=1e-4, atol=5e-5)
    assert jnp.allclose(out["soft_loss"], 0.0)
    assert jnp.allclose(out["total_loss"], (1.0 - ALPHA) * ref_hard, rtol=1e-4, atol=5e-5)

    print("KERNEL_OK")
</pallas_src>

<mosaic_0001>
module attributes {stable_mosaic.version = 11 : i64} {
  func.func @kernel(%arg0: i32, %arg1: memref<16x1xi32, #tpu.memory_space<vmem>>, %arg2: memref<16x1000xf32, #tpu.memory_space<vmem>>, %arg3: memref<16x1000xf32, #tpu.memory_space<vmem>>, %arg4: memref<16x1000xf32, #tpu.memory_space<vmem>>, %arg5: memref<16x2xf32, #tpu.memory_space<vmem>>) attributes {dimension_semantics = [#tpu.dimension_semantics<parallel>], iteration_bounds = array<i64: 2>, scalar_prefetch = 0 : i64, scratch_operands = 0 : i64, tpu.core_type = #tpu.core_type<tc>, window_params = [{transform_indices = @transform_0, window_bounds = array<i64: 16, 1>}, {transform_indices = @transform_1, window_bounds = array<i64: 16, 1000>}, {transform_indices = @transform_2, window_bounds = array<i64: 16, 1000>}, {transform_indices = @transform_3, window_bounds = array<i64: 16, 1000>}, {transform_indices = @transform_4, window_bounds = array<i64: 16, 2>}]} {
    %c0 = arith.constant 0 : index
    %c0_0 = arith.constant 0 : index
    %0 = vector.load %arg1[%c0, %c0_0] : memref<16x1xi32, #tpu.memory_space<vmem>>, vector<16x1xi32>
    %c0_1 = arith.constant 0 : index
    %c0_2 = arith.constant 0 : index
    %1 = vector.load %arg2[%c0_1, %c0_2] : memref<16x1000xf32, #tpu.memory_space<vmem>>, vector<16x1000xf32>
    %c0_3 = arith.constant 0 : index
    %c0_4 = arith.constant 0 : index
    %2 = vector.load %arg3[%c0_3, %c0_4] : memref<16x1000xf32, #tpu.memory_space<vmem>>, vector<16x1000xf32>
    %c0_5 = arith.constant 0 : index
    %c0_6 = arith.constant 0 : index
    %3 = vector.load %arg4[%c0_5, %c0_6] : memref<16x1000xf32, #tpu.memory_space<vmem>>, vector<16x1000xf32>
    %4 = tpu.iota {dimensions = array<i32: 1>} : vector<16x1000xi32>
    %5 = vector.broadcast %0 : vector<16x1xi32> to vector<16x1000xi32>
    %6 = arith.cmpi eq, %4, %5 : vector<16x1000xi32>
    %7 = arith.extui %6 : vector<16x1000xi1> to vector<16x1000xi32>
    %8 = arith.sitofp %7 : vector<16x1000xi32> to vector<16x1000xf32>
    %c16_i32 = arith.constant 16 : i32
    %9 = arith.muli %arg0, %c16_i32 : i32
    %10 = tpu.iota {dimensions = array<i32: 0>} : vector<16x1xi32>
    %11 = vector.broadcast %9 : i32 to vector<16x1xi32>
    %12 = arith.addi %11, %10 : vector<16x1xi32>
    %c20_i32 = arith.constant 20 : i32
    %13 = vector.broadcast %c20_i32 : i32 to vector<16x1xi32>
    %14 = arith.cmpi slt, %12, %13 : vector<16x1xi32>
    %cst = arith.constant dense<0xFF800000> : vector<16xf32>
    %15 = vector.multi_reduction <maximumf>, %1, %cst [1] : vector<16x1000xf32> to vector<16xf32>
    %16 = vector.shape_cast %15 : vector<16xf32> to vector<16x1xf32>
    %17 = vector.broadcast %16 : vector<16x1xf32> to vector<16x1000xf32>
    %18 = arith.subf %1, %17 : vector<16x1000xf32>
    %cst_7 = arith.constant 0.333333343 : f32
    %19 = vector.broadcast %cst_7 : f32 to vector<16x1000xf32>
    %20 = arith.mulf %18, %19 : vector<16x1000xf32>
    %21 = math.exp %20 : vector<16x1000xf32>
    %22 = arith.mulf %21, %21 : vector<16x1000xf32>
    %23 = arith.mulf %22, %21 : vector<16x1000xf32>
    %cst_8 = arith.constant dense<0.000000e+00> : vector<16xf32>
    %24 = vector.multi_reduction <add>, %23, %cst_8 [1] : vector<16x1000xf32> to vector<16xf32>
    %25 = vector.shape_cast %24 : vector<16xf32> to vector<16x1xf32>
    %26 = math.log %25 : vector<16x1xf32>
    %cst_9 = arith.constant dense<0.000000e+00> : vector<16xf32>
    %27 = vector.multi_reduction <add>, %21, %cst_9 [1] : vector<16x1000xf32> to vector<16xf32>
    %28 = vector.shape_cast %27 : vector<16xf32> to vector<16x1xf32>
    %29 = math.log %28 : vector<16x1xf32>
    %cst_10 = arith.constant dense<0xFF800000> : vector<16xf32>
    %30 = vector.multi_reduction <maximumf>, %2, %cst_10 [1] : vector<16x1000xf32> to vector<16xf32>
    %31 = vector.shape_cast %30 : vector<16xf32> to vector<16x1xf32>
    %32 = vector.broadcast %31 : vector<16x1xf32> to vector<16x1000xf32>
    %33 = arith.subf %2, %32 : vector<16x1000xf32>
    %cst_11 = arith.constant 0.333333343 : f32
    %34 = vector.broadcast %cst_11 : f32 to vector<16x1000xf32>
    %35 = arith.mulf %33, %34 : vector<16x1000xf32>
    %36 = math.exp %35 : vector<16x1000xf32>
    %37 = arith.mulf %36, %36 : vector<16x1000xf32>
    %38 = arith.mulf %37, %36 : vector<16x1000xf32>
    %cst_12 = arith.constant dense<0.000000e+00> : vector<16xf32>
    %39 = vector.multi_reduction <add>, %38, %cst_12 [1] : vector<16x1000xf32> to vector<16xf32>
    %40 = vector.shape_cast %39 : vector<16xf32> to vector<16x1xf32>
    %41 = math.log %40 : vector<16x1xf32>
    %cst_13 = arith.constant dense<0.000000e+00> : vector<16xf32>
    %42 = vector.multi_reduction <add>, %36, %cst_13 [1] : vector<16x1000xf32> to vector<16xf32>
    %43 = vector.shape_cast %42 : vector<16xf32> to vector<16x1xf32>
    %44 = math.log %43 : vector<16x1xf32>
    %cst_14 = arith.constant dense<0xFF800000> : vector<16xf32>
    %45 = vector.multi_reduction <maximumf>, %3, %cst_14 [1] : vector<16x1000xf32> to vector<16xf32>
    %46 = vector.shape_cast %45 : vector<16xf32> to vector<16x1xf32>
    %47 = vector.broadcast %46 : vector<16x1xf32> to vector<16x1000xf32>
    %48 = arith.subf %3, %47 : vector<16x1000xf32>
    %cst_15 = arith.constant 0.333333343 : f32
    %49 = vector.broadcast %cst_15 : f32 to vector<16x1000xf32>
    %50 = arith.mulf %48, %49 : vector<16x1000xf32>
    %51 = math.exp %50 : vector<16x1000xf32>
    %cst_16 = arith.constant dense<0.000000e+00> : vector<16xf32>
    %52 = vector.multi_reduction <add>, %51, %cst_16 [1] : vector<16x1000xf32> to vector<16xf32>
    %53 = vector.shape_cast %52 : vector<16xf32> to vector<16x1xf32>
    %54 = math.log %53 : vector<16x1xf32>
    %55 = tpu.reciprocal %53 : vector<16x1xf32> -> vector<16x1xf32>
    %56 = arith.addf %18, %33 : vector<16x1000xf32>
    %57 = arith.addf %26, %41 : vector<16x1xf32>
    %58 = arith.mulf %8, %56 : vector<16x1000xf32>
    %cst_17 = arith.constant dense<0.000000e+00> : vector<16xf32>
    %59 = vector.multi_reduction <add>, %58, %cst_17 [1] : vector<16x1000xf32> to vector<16xf32>
    %60 = vector.shape_cast %59 : vector<16xf32> to vector<16x1xf32>
    %61 = arith.subf %57, %60 : vector<16x1xf32>
    %cst_18 = arith.constant 2.000000e+00 : f32
    %62 = vector.broadcast %cst_18 : f32 to vector<16x1000xf32>
    %63 = arith.mulf %62, %50 : vector<16x1000xf32>
    %cst_19 = arith.constant 0.333333343 : f32
    %64 = vector.broadcast %cst_19 : f32 to vector<16x1000xf32>
    %65 = arith.mulf %56, %64 : vector<16x1000xf32>
    %66 = arith.subf %63, %65 : vector<16x1000xf32>
    %67 = arith.mulf %51, %66 : vector<16x1000xf32>
    %cst_20 = arith.constant dense<0.000000e+00> : vector<16xf32>
    %68 = vector.multi_reduction <add>, %67, %cst_20 [1] : vector<16x1000xf32> to vector<16xf32>
    %69 = vector.shape_cast %68 : vector<16xf32> to vector<16x1xf32>
    %70 = arith.mulf %69, %55 : vector<16x1xf32>
    %71 = arith.addf %70, %29 : vector<16x1xf32>
    %72 = arith.addf %71, %44 : vector<16x1xf32>
    %cst_21 = arith.constant 2.000000e+00 : f32
    %73 = vector.broadcast %cst_21 : f32 to vector<16x1xf32>
    %74 = arith.mulf %73, %54 : vector<16x1xf32>
    %75 = arith.subf %72, %74 : vector<16x1xf32>
    %cst_22 = arith.constant 0.000000e+00 : f32
    %76 = vector.broadcast %cst_22 : f32 to vector<16x1xf32>
    %77 = arith.select %14, %61, %76 : vector<16x1xi1>, vector<16x1xf32>
    %c0_23 = arith.constant 0 : index
    %c0_24 = arith.constant 0 : index
    %78 = vector.load %arg5[%c0_23, %c0_24] : memref<16x2xf32, #tpu.memory_space<vmem>>, vector<16x1xf32>
    tpu.vector_store %arg5[%c0_23, %c0_24], %77 {strides = array<i32>} : memref<16x2xf32, #tpu.memory_space<vmem>>, vector<16x1xf32>,
    %79 = arith.select %14, %75, %76 : vector<16x1xi1>, vector<16x1xf32>
    %c0_25 = arith.constant 0 : index
    %c1 = arith.constant 1 : index
    %80 = vector.load %arg5[%c0_25, %c1] : memref<16x2xf32, #tpu.memory_space<vmem>>, vector<16x1xf32>
    tpu.vector_store %arg5[%c0_25, %c1], %79 {strides = array<i32>} : memref<16x2xf32, #tpu.memory_space<vmem>>, vector<16x1xf32>,
    return
  }
  func.func @transform_0(%arg0: i32) -> (i32, i32) {
    %c0_i32 = arith.constant 0 : i32
    %c0_i32_0 = arith.constant 0 : i32
    return %arg0, %c0_i32 : i32, i32
  }
  func.func @transform_1(%arg0: i32) -> (i32, i32) {
    %c0_i32 = arith.constant 0 : i32
    %c0_i32_0 = arith.constant 0 : i32
    return %arg0, %c0_i32 : i32, i32
  }
  func.func @transform_2(%arg0: i32) -> (i32, i32) {
    %c0_i32 = arith.constant 0 : i32
    %c0_i32_0 = arith.constant 0 : i32
    return %arg0, %c0_i32 : i32, i32
  }
  func.func @transform_3(%arg0: i32) -> (i32, i32) {
    %c0_i32 = arith.constant 0 : i32
    %c0_i32_0 = arith.constant 0 : i32
    return %arg0, %c0_i32 : i32, i32
  }
  func.func @transform_4(%arg0: i32) -> (i32, i32) {
    %c0_i32 = arith.constant 0 : i32
    %c0_i32_0 = arith.constant 0 : i32
    return %arg0, %c0_i32 : i32, i32
  }
}

</mosaic_0001>

<bundles_post_ra>
// kernel: tpu_custom_call.1
= control target key start
LH: loop header
LB: loop body
LE: loop exit
PB: predicated region body
PF: predicated region fallthrough
CT: control target
= control target key end

     0   :  { %9 = vsyncpa [#allocation3], 0  ;;  %s2669_s0 = inlined_call_operand.vmem [shape: s32[20,1], index: 0, kind: input, shape index: {}]   ;;  %s2670_s1 = inlined_call_operand.hbm [shape: f32[20,1000], index: 1, kind: input, shape index: {}]   ;;  %s2671_s2 = inlined_call_operand.hbm [shape: f32[20,1000], index: 2, kind: input, shape index: {}]   ;;  %s2672_s3 = inlined_call_operand.hbm [shape: f32[20,1000], index: 3, kind: input, shape index: {}]   ;;  %s2673_s4 = inlined_call_operand.vmem [shape: f32[32,2], index: 4, kind: output, shape index: {}]  }
   0x1   :  { %11 = vsyncpa [#allocation3 + $0x1], 0 }
   0x2   :  { %12 = vsyncpa [#allocation5], 0 }
   0x3   :  { %14 = vsyncpa [#allocation5 + $0x1], 0  ;;  %s1615_s15 = smov 0   ;;  %s1617_s16 = smov 0  }
   0x4   :  { %s1619_s17 = smov 0   ;;  %s1621_s18 = smov 0  }
   0x5 LB: > { %s1634_s19 = sadd.s32 4294967295, %s1577_s18   ;;  %s1637_s20 = sadd.s32 1, %s1577_s18   ;;  %s1577_s18 = sphi %s1621_s18, %s2853_s18   ;;  %s1573_s17 = sphi %s1619_s17, %s2852_s17   ;;  %s1569_s16 = sphi %s1617_s16, %s2851_s16   ;;  %s1565_s15 = sphi %s1615_s15, %s2850_s15  }
   0x6   : > { %s50_s21 = ssub.s32 %s1577_s18, %s1637_s20  ;;  %s53_s22 = sadd.s32 1, %s1573_s17 }
   0x7   : > { %p51_p0 = scmp.eq.s32.totalorder %s50_s21, 0  ;;  %p60_p1 = scmp.ne.s32.totalorder %s1573_s17, %s1569_s16 }
   0x8   : > { %p61_p2 = scmp.eq.s32.totalorder %s1577_s18, 0  ;;  %p66_p3 = scmp.ne.s32.totalorder %s1569_s16, %s1565_s15 }
   0x9   : > { %s1647_s23 = scalar_select %p51_p0, %s1573_s17, %s53_s22  }
   0xa   : > { %p1649_p4 = por %p61_p2, %p60_p1  ;;  %p67_p5 = scmp.eq.s32.totalorder %s1634_s19, 0 }
   0xb   : > { %p1226_p7 = scmp.ge.s32.totalorder %s1577_s18, 2 }
   0xc   : > { %p1654_p6 = por %p67_p5, %p66_p3 }
   0xd   : > { %164 = sbr.rel (%p1226_p7) target bundleno = 125 (0x7d), region = 16 }
  0x14   : > { %184 = sbr.rel (!%p1649_p4) target bundleno = 55 (0x37), region = 24  ;;  %s185_s26 = sand.u32 (%p1649_p4), 1, %s1573_s17  }
  0x15   : > { %s1228_s27 = sshll.u32 (%p1649_p4), %s1577_s18, 1  ;;  %s1227_s28 = sshll.u32 (%p1649_p4), %s185_s26, 7 }
  0x16   : > { %s191_s29 = ssub.s32 (%p1649_p4), 3, %s1228_s27  ;;  %s1666_s6 = scalar_lea.sflag (%p1649_p4), [#allocation3], %s185_s26 }
  0x17   : > { %p192_p8 = scmp.lt.s32.totalorder (%p1649_p4), %s191_s29, 2  ;;  %s189_s7 = scalar_lea.vmem (%p1649_p4), [#allocation2], %s1227_s28 }
  0x1b   : > { %s2855_s29 = smov (!%p192_p8, %s191_s29), 2 }
  0x1c   : > { %s1663_s30 = sshll.u32 %s2855_s29, 10 }
  0x1d   : > { %s197_s5 = ssub.s32 2048, %s1663_s30 }
  0x1e   : > { %198 = vsyncadd %s1666_s6, %s197_s5  ;;  %p1231_p9 = scmp.ne.s32.totalorder %s1663_s30, 0  ;;  %s1283_s8 = sshll.u32 %s1577_s18, 11 }
  0x1f   : > { %s1674_s11 = scalar_lea.hbm %s2670_s1, %s1283_s8  ;;  %s204_s12 = sshll.u32 %s189_s7, 4  ;;  %s1676_s12 = int_to_ptr.vmem [resolvable:$true] %s204_s12 }
  0x20   : > { %s1455_s13 = scalar_lea.hbm %s1674_s11, %s1663_s30  ;;  %s1459_s21 = scalar_lea.hbm %s2670_s1, 3072 }
  0x21   : > { %p1456_p10 = scmp.ne.s32.totalorder %s1674_s11, %s1455_s13  ;;  %p1460_p13 = scmp.lt.u32.totalorder %s1674_s11, %s2670_s1 }
  0x22   : > { %p1461_p0 = scmp.lt.u32.totalorder %s1459_s21, %s1455_s13  ;;  %p1463_p2 = scmp.lt.u32.totalorder %s1455_s13, %s1674_s11 }
  0x23   : > { %p1457_p11 = pnand %p1456_p10, %p1231_p9 }
  0x24   : > { %p1462_p1 = por %p1461_p0, %p1460_p13 }
  0x25   : > { %p1458_p12 = pneg %p1457_p11 }
  0x26   : > { %p1464_p3 = por %p1463_p2, %p1462_p1 }
  0x28   : > { %p1465_p5 = pnand %p1464_p3, %p1458_p12 }
  0x2a   : > { %1468 = shalt.err (!%p1465_p5)
}
  0x2b   : > { %s1469_s27 = scalar_lea.vmem %s1676_s12, %s1663_s30  ;;  %s1579_s28 = smov [#allocation2]  }
  0x2c   : > { %p1470_p7 = scmp.ne.s32.totalorder %s1676_s12, %s1469_s27  ;;  %s1473_s29 = sshll.u32 %s1579_s28, 4  ;;  %s1474_s29 = int_to_ptr.vmem [resolvable:$false] %s1473_s29 }
  0x2d   : > { %s1475_s5 = scalar_lea.vmem %s1474_s29, 4096  ;;  %p1476_p11 = scmp.lt.s32.totalorder %s1676_s12, %s1474_s29 }
  0x2e   : > { %p1471_p8 = pnand %p1470_p7, %p1231_p9  ;;  %p1477_p13 = scmp.lt.s32.totalorder %s1475_s5, %s1469_s27 }
  0x30   : > { %p1472_p10 = pneg %p1471_p8  ;;  %p1478_p0 = por %p1477_p13, %p1476_p11 }
  0x32   : > { %p1479_p1 = pnand %p1478_p0, %p1472_p10 }
  0x34   : > { %1482 = shalt.err (!%p1479_p1)
}
  0x35   : > { %s1580_s7 = smov 1024   ;;  %s1581_s8 = smov 64  }
  0x36   : > { %210 = dma.hbm_to_vmem [thread:$0]  (%p1231_p9), %s1674_s11, %s1663_s30, %s1676_s12, %s1666_s6, %s1580_s7, %s1580_s7, %s1581_s8  }
  0x37 PF: > { %213 = sbr.rel (!%p1649_p4) target bundleno = 90 (0x5a), region = 28  ;;  %s214_s9 = sand.u32 (%p1649_p4), 1, %s1577_s18  }
  0x38   : > { %s216_s10 = sand.u32 (%p1649_p4), 1, %s1573_s17   ;;  %s1237_s14 = sshll.u32 (%p1649_p4), %s1577_s18, 1 }
  0x39   : > { %s1236_s13 = sshll.u32 (%p1649_p4), %s216_s10, 7  ;;  %s220_s15 = ssub.s32 (%p1649_p4), 3, %s1237_s14 }
  0x3a   : > { %p221_p12 = scmp.lt.s32.totalorder (%p1649_p4), %s220_s15, 2  ;;  %s1711_s26 = scalar_lea.sflag (%p1649_p4), [#allocation5], %s214_s9 }
  0x3b   : > { %s218_s30 = scalar_lea.vmem (%p1649_p4), [#allocation4], %s1236_s13 }
  0x3e   : > { %s2857_s15 = smov (!%p221_p12, %s220_s15), 2 }
  0x3f   : > { %s1708_s21 = sshll.u32 %s2857_s15, 10 }
  0x40   : > { %s226_s22 = ssub.s32 2048, %s1708_s21 }
  0x41   : > { %227 = vsyncadd %s1711_s26, %s226_s22  ;;  %p1240_p9 = scmp.ne.s32.totalorder %s1708_s21, 0  ;;  %s1286_s6 = sshll.u32 %s1577_s18, 11 }
  0x42   : > { %s1719_s27 = scalar_lea.hbm %s2671_s2, %s1286_s6  ;;  %s233_s28 = sshll.u32 %s218_s30, 4  ;;  %s1721_s28 = int_to_ptr.vmem [resolvable:$true] %s233_s28 }
  0x43   : > { %s1483_s29 = scalar_lea.hbm %s1719_s27, %s1708_s21  ;;  %s1487_s8 = scalar_lea.hbm %s2671_s2, 3072 }
  0x44   : > { %p1484_p2 = scmp.ne.s32.totalorder %s1719_s27, %s1483_s29  ;;  %p1488_p7 = scmp.lt.u32.totalorder %s1719_s27, %s2671_s2 }
  0x45   : > { %p1489_p8 = scmp.lt.u32.totalorder %s1487_s8, %s1483_s29  ;;  %p1491_p11 = scmp.lt.u32.totalorder %s1483_s29, %s1719_s27 }
  0x46   : > { %p1485_p3 = pnand %p1484_p2, %p1240_p9 }
  0x47   : > { %p1490_p10 = por %p1489_p8, %p1488_p7 }
  0x48   : > { %p1486_p5 = pneg %p1485_p3 }
  0x49   : > { %p1492_p13 = por %p1491_p11, %p1490_p10 }
  0x4b   : > { %p1493_p0 = pnand %p1492_p13, %p1486_p5 }
  0x4d   : > { %1496 = shalt.err (!%p1493_p0)
}
  0x4e   : > { %s1497_s13 = scalar_lea.vmem %s1721_s28, %s1708_s21  ;;  %s1582_s14 = smov [#allocation4]  }
  0x4f   : > { %p1498_p1 = scmp.ne.s32.totalorder %s1721_s28, %s1497_s13  ;;  %s1501_s15 = sshll.u32 %s1582_s14, 4  ;;  %s1502_s15 = int_to_ptr.vmem [resolvable:$false] %s1501_s15 }
  0x50   : > { %s1503_s22 = scalar_lea.vmem %s1502_s15, 4096  ;;  %p1504_p3 = scmp.lt.s32.totalorder %s1721_s28, %s1502_s15 }
  0x51   : > { %p1499_p12 = pnand %p1498_p1, %p1240_p9  ;;  %p1505_p7 = scmp.lt.s32.totalorder %s1503_s22, %s1497_s13 }
  0x53   : > { %p1500_p2 = pneg %p1499_p12  ;;  %p1506_p8 = por %p1505_p7, %p1504_p3 }
  0x55   : > { %p1507_p10 = pnand %p1506_p8, %p1500_p2 }
  0x57   : > { %1510 = shalt.err (!%p1507_p10)
}
  0x58   : > { %s1583_s30 = smov 1024   ;;  %s1584_s6 = smov 64  }
  0x59   : > { %239 = dma.hbm_to_vmem [thread:$0]  (%p1240_p9), %s1719_s27, %s1708_s21, %s1721_s28, %s1711_s26, %s1583_s30, %s1583_s30, %s1584_s6  }
  0x5a PF: > { %242 = sbr.rel (!%p1649_p4) target bundleno = 125 (0x7d), region = 32  ;;  %s243_s11 = sand.u32 (%p1649_p4), 1, %s1577_s18  }
  0x5b   : > { %s245_s12 = sand.u32 (%p1649_p4), 1, %s1573_s17   ;;  %s1246_s5 = sshll.u32 (%p1649_p4), %s1577_s18, 1 }
  0x5c   : > { %s1245_s29 = sshll.u32 (%p1649_p4), %s245_s12, 7  ;;  %s249_s7 = ssub.s32 (%p1649_p4), 3, %s1246_s5 }
  0x5d   : > { %p250_p5 = scmp.lt.s32.totalorder (%p1649_p4), %s249_s7, 2  ;;  %s1756_s10 = scalar_lea.sflag (%p1649_p4), [#allocation5], %s243_s11 }
  0x5e   : > { %s247_s21 = scalar_lea.vmem (%p1649_p4), [#allocation6], %s1245_s29 }
  0x61   : > { %s2859_s7 = smov (!%p250_p5, %s249_s7), 2 }
  0x62   : > { %s1753_s8 = sshll.u32 %s2859_s7, 10 }
  0x63   : > { %s255_s9 = ssub.s32 2048, %s1753_s8 }
  0x64   : > { %256 = vsyncadd %s1756_s10, %s255_s9  ;;  %p1249_p4 = scmp.ne.s32.totalorder %s1753_s8, 0  ;;  %s1289_s24 = sshll.u32 %s1577_s18, 11 }
  0x65   : > { %s1764_s28 = scalar_lea.hbm %s2672_s3, %s1289_s24  ;;  %s262_s13 = sshll.u32 %s247_s21, 4  ;;  %s1766_s13 = int_to_ptr.vmem [resolvable:$true] %s262_s13 }
  0x66   : > { %s1511_s14 = scalar_lea.hbm %s1764_s28, %s1753_s8  ;;  %s1515_s30 = scalar_lea.hbm %s2672_s3, 3072 }
  0x67   : > { %p1512_p9 = scmp.ne.s32.totalorder %s1764_s28, %s1511_s14  ;;  %p1516_p0 = scmp.lt.u32.totalorder %s1764_s28, %s2672_s3 }
  0x68   : > { %p1517_p1 = scmp.lt.u32.totalorder %s1515_s30, %s1511_s14  ;;  %p1519_p2 = scmp.lt.u32.totalorder %s1511_s14, %s1764_s28 }
  0x69   : > { %p1513_p11 = pnand %p1512_p9, %p1249_p4 }
  0x6a   : > { %p1518_p12 = por %p1517_p1, %p1516_p0 }
  0x6b   : > { %p1514_p13 = pneg %p1513_p11 }
  0x6c   : > { %p1520_p3 = por %p1519_p2, %p1518_p12 }
  0x6e   : > { %p1521_p7 = pnand %p1520_p3, %p1514_p13 }
  0x70   : > { %1524 = shalt.err (!%p1521_p7)
}
  0x71   : > { %s1525_s12 = scalar_lea.vmem %s1766_s13, %s1753_s8  ;;  %s1585_s29 = smov [#allocation6]  }
  0x72   : > { %p1526_p8 = scmp.ne.s32.totalorder %s1766_s13, %s1525_s12  ;;  %s1529_s5 = sshll.u32 %s1585_s29, 4  ;;  %s1530_s5 = int_to_ptr.vmem [resolvable:$false] %s1529_s5 }
  0x73   : > { %s1531_s7 = scalar_lea.vmem %s1530_s5, 4096  ;;  %p1532_p9 = scmp.lt.s32.totalorder %s1766_s13, %s1530_s5 }
  0x74   : > { %p1527_p10 = pnand %p1526_p8, %p1249_p4  ;;  %p1533_p11 = scmp.lt.s32.totalorder %s1531_s7, %s1525_s12 }
  0x76   : > { %p1528_p5 = pneg %p1527_p10  ;;  %p1534_p0 = por %p1533_p11, %p1532_p9 }
  0x78   : > { %p1535_p1 = pnand %p1534_p0, %p1528_p5 }
  0x7a   : > { %1538 = shalt.err (!%p1535_p1)
}
  0x7b   : > { %s1586_s9 = smov 1024   ;;  %s1587_s21 = smov 64  }
  0x7c   : > { %268 = dma.hbm_to_vmem [thread:$0]  (%p1249_p4), %s1764_s28, %s1753_s8, %s1766_s13, %s1756_s10, %s1586_s9, %s1586_s9, %s1587_s21  }
  0x7d PF: > { %p1254_p13 = scmp.ge.s32.totalorder %s1577_s18, 1  ;;  %p270_p12 = scmp.lt.s32.totalorder %s1577_s18, 3 }
  0x7f   : > { %p271_p2 = pnand %p1254_p13, %p270_p12 }
  0x81   : > { %274 = sbr.rel (%p271_p2) target bundleno = 576 (0x240), region = 36 }
  0x88   : > { %s276_s24 = sand.u32 1, %s1569_s16  }
  0x89   : > { %s1796_s26 = sshll.u32 %s276_s24, 7  ;;  %s277_s27 = scalar_lea.sflag [#allocation3], %s276_s24 }
  0x8a   : > { %s1799_s14 = scalar_lea.vmem [#allocation2], %s1796_s26 }
  0x8b   : > { %1556 = dma.done.wait (%p1654_p6), %s277_s27, 2048  }
  0x8c   : > { %1558 = vsyncadd (%p1654_p6), %s277_s27, 4294965248  ;;  %s285_s18 = sand.u32 1, %s1634_s19   ;;  %s1807_s10 = scalar_lea.vmem [#allocation4], %s1796_s26 }
  0x8d   : > { %s286_s8 = scalar_lea.sflag [#allocation5], %s285_s18 }
  0x8e   : > { %1560 = dma.done.wait (%p1654_p6), %s286_s8, 4096  }
  0x8f   : > { %1562 = vsyncadd (%p1654_p6), %s286_s8, 4294963200  ;;  %v1588_v0 = vmov 0   ;;  %v1814_v1 = vld [vmem:[%s1799_s14 + $0x40] sm:$0xff]  ;;  %v1817_v2 = vld [vmem:[%s1799_s14 + $0x48] sm:$0xff]  ;;  %vm507_vm0 = vcmask 850944   ;;  %s1940_s25 = scalar_lea.vmem [#allocation6], %s1796_s26 }
  0x90   : > { %1334 = vset.pattern.permute.xlu1 %v1588_v0  ;;  %1333 = vset.pattern.permute.xlu0 %v1588_v0  ;;  %v1820_v3 = vld [vmem:[%s1799_s14 + $0x50] sm:$0xff]  ;;  %v1823_v4 = vld [vmem:[%s1799_s14 + $0x58] sm:$0xff]  ;;  %v1826_v5 = vld [vmem:[%s1799_s14 + $0x60] sm:$0xff]  ;;  %s2014_s28 = sshll.u32 %s1634_s19, 1  ;;  %s1278_s11 = sshll.u32 %s1634_s19, 4 }
  0x91   : > { %v1829_v6 = vld [vmem:[%s1799_s14 + $0x68] sm:$0xff]  ;;  %v513_v7 = vmax.f32 %v1814_v1, %v1820_v3  ;;  %v1834_v8 = vld [vmem:[%s1799_s14 + $0x70] sm:$0xff]  ;;  %v1837_v9 = vld [vmem:[%s1799_s14 + $0x78] sm:$0xff]  ;;  %v514_v10 = vmax.f32 %v1817_v2, %v1823_v4  ;;  %p347_p6 = scmp.lt.s32.totalorder %s2014_s28, 2  ;;  %p375_p4 = scmp.lt.s32.totalorder %s2014_s28, 3 }
  0x92   : > { %v1842_v11 = vld [vmem:[%s1799_s14] sm:$0xff]  ;;  %v518_v13 = vsel %vm507_vm0, %v1837_v9, -inf  ;;  %v1848_v14 = vld [vmem:[%s1799_s14 + $0x8] sm:$0xff]  ;;  %v1851_v15 = vld [vmem:[%s1799_s14 + $0x10] sm:$0xff] }
  0x93   : > { %v515_v12 = vmax.f32 %v513_v7, %v1826_v5  ;;  %v1854_v16 = vld [vmem:[%s1799_s14 + $0x18] sm:$0xff]  ;;  %v516_v17 = vmax.f32 %v514_v10, %v1829_v6  ;;  %v1858_v18 = vld [vmem:[%s1799_s14 + $0x20] sm:$0xff]  ;;  %v1861_v19 = vld [vmem:[%s1799_s14 + $0x28] sm:$0xff]  ;;  %v502_v21 = vmax.f32 %v1842_v11, %v1851_v15  ;;  %s348_s13 = scalar_select %p347_p6, %s2014_s28, 2 }
  0x94   : > { %v1864_v20 = vld [vmem:[%s1799_s14 + $0x30] sm:$0xff]  ;;  %v503_v22 = vmax.f32 %v1848_v14, %v1854_v16  ;;  %v1872_v24 = vld [vmem:[%s1799_s14 + $0x38] sm:$0xff]  ;;  %v1875_v25 = vld [vmem:[%s1807_s10 + $0x40] sm:$0xff]  ;;  %s2861_s28 = smov (!%p375_p4, %s2014_s28), 3 }
  0x95   : > { %v517_v23 = vmax.f32 %v515_v12, %v1834_v8  ;;  %v1878_v26 = vld [vmem:[%s1807_s10 + $0x48] sm:$0xff]  ;;  %v519_v27 = vmax.f32 %v516_v17, %v518_v13  ;;  %v504_v28 = vmax.f32 %v502_v21, %v1858_v18  ;;  %v508_v30 = vsel %vm507_vm0, %v1872_v24, -inf  ;;  %v1885_v31 = vld [vmem:[%s1807_s10 + $0x50] sm:$0xff]  ;;  %v1888_v32 = vld [vmem:[%s1807_s10 + $0x58] sm:$0xff]  ;;  %s1259_s15 = sshll.u32 %s348_s13, 3  ;;  %s1261_s12 = sshll.u32 %s2861_s28, 3 }
  0x96   : > { %v505_v29 = vmax.f32 %v503_v22, %v1861_v19  ;;  %v1891_v33 = vld [vmem:[%s1807_s10 + $0x60] sm:$0xff]  ;;  %v1894_v34 = vld [vmem:[%s1807_s10 + $0x68] sm:$0xff]  ;;  %v1897_v35 = vld [vmem:[%s1807_s10 + $0x70] sm:$0xff]  ;;  %v677_v37 = vmax.f32 %v1875_v25, %v1885_v31  ;;  %v678_v38 = vmax.f32 %v1878_v26, %v1888_v32  ;;  %s350_s6 = scalar_lea.vmem %s2669_s0, %s1259_s15  ;;  %s2646_s5 = scalar_lea.vmem %s2673_s4, %s1261_s12 }
  0x97   : > { %v1900_v36 = vld [vmem:[%s1807_s10 + $0x78] sm:$0xff]  ;;  %v520_v39 = vmax.f32 %v517_v23, %v519_v27  ;;  %v506_v40 = vmax.f32 %v504_v28, %v1864_v20  ;;  %v1910_v43 = vld [vmem:[%s1807_s10] sm:$0xff]  ;;  %v1913_v44 = vld [vmem:[%s1807_s10 + $0x8] sm:$0xff] }
  0x98   : > { %v509_v41 = vmax.f32 %v505_v29, %v508_v30  ;;  %v682_v42 = vsel %vm507_vm0, %v1900_v36, -inf  ;;  %v1916_v45 = vld [vmem:[%s1807_s10 + $0x10] sm:$0xff]  ;;  %v679_v46 = vmax.f32 %v677_v37, %v1891_v33  ;;  %v680_v47 = vmax.f32 %v678_v38, %v1894_v34  ;;  %v1921_v48 = vld [vmem:[%s1807_s10 + $0x18] sm:$0xff]  ;;  %v1924_v49 = vld [vmem:[%s1807_s10 + $0x20] sm:$0xff] }
  0x99   : > { %v1927_v50 = vld [vmem:[%s1807_s10 + $0x28] sm:$0xff]  ;;  %v667_v51 = vmax.f32 %v1910_v43, %v1916_v45  ;;  %521 = vmax.xlane.f32.xlu1 %v520_v39  ;;  %v1932_v53 = vld [vmem:[%s1807_s10 + $0x30] sm:$0xff]  ;;  %v1935_v54 = vld [vmem:[%s1807_s10 + $0x38] sm:$0xff]  ;;  %v668_v55 = vmax.f32 %v1913_v44, %v1921_v48 }
  0x9a   : > { %v510_v52 = vmax.f32 %v506_v40, %v509_v41  ;;  %v1943_v56 = vld [vmem:[%s1940_s25 + $0x40] sm:$0xff]  ;;  %v681_v57 = vmax.f32 %v679_v46, %v1897_v35  ;;  %v683_v58 = vmax.f32 %v680_v47, %v682_v42  ;;  %v672_v60 = vsel %vm507_vm0, %v1935_v54, -inf  ;;  %v1950_v61 = vld [vmem:[%s1940_s25 + $0x48] sm:$0xff]  ;;  %v1953_v62 = vld [vmem:[%s1940_s25 + $0x50] sm:$0xff] }
  0x9b   : > { %v669_v59 = vmax.f32 %v667_v51, %v1924_v49  ;;  %v1956_v63 = vld [vmem:[%s1940_s25 + $0x58] sm:$0xff]  ;;  %v670_v0 = vmax.f32 %v668_v55, %v1927_v50  ;;  %v1960_v7 = vld [vmem:[%s1940_s25 + $0x60] sm:$0xff]  ;;  %v1963_v10 = vld [vmem:[%s1940_s25 + $0x68] sm:$0xff]  ;;  %v841_v13 = vmax.f32 %v1943_v56, %v1953_v62 }
  0x9c   : > { %511 = vmax.xlane.f32.xlu0 %v510_v52  ;;  %2743 = vst [vmem:[#allocation9_spill] sm:$0xff] %v1963_v10  ;;  %v1966_v12 = vld [vmem:[%s1940_s25 + $0x70] sm:$0xff]  ;;  %v842_v17 = vmax.f32 %v1950_v61, %v1956_v63  ;;  %v684_v21 = vmax.f32 %v681_v57, %v683_v58  ;;  %v1974_v23 = vld [vmem:[%s1940_s25 + $0x78] sm:$0xff]  ;;  %v1977_v27 = vld [vmem:[%s1940_s25] sm:$0xff] }
  0x9d   : > { %2744 = vst [vmem:[#allocation10_spill] sm:$0xff] %v1966_v12  ;;  %v671_v22 = vmax.f32 %v669_v59, %v1932_v53  ;;  %2745 = vst [vmem:[#allocation11_spill] sm:$0xff] %v1974_v23  ;;  %v1980_v28 = vld [vmem:[%s1940_s25 + $0x8] sm:$0xff]  ;;  %v673_v29 = vmax.f32 %v670_v0, %v672_v60  ;;  %v843_v30 = vmax.f32 %v841_v13, %v1960_v7  ;;  %v846_v38 = vsel %vm507_vm0, %v1974_v23, -inf  ;;  %v1987_v39 = vld [vmem:[%s1940_s25 + $0x10] sm:$0xff] }
  0x9e   : > { %v844_v37 = vmax.f32 %v842_v17, %v1963_v10  ;;  %v1990_v40 = vld [vmem:[%s1940_s25 + $0x18] sm:$0xff]  ;;  %v1993_v41 = vld [vmem:[%s1940_s25 + $0x20] sm:$0xff]  ;;  %685 = vmax.xlane.f32.xlu1 %v684_v21  ;;  %v1996_v42 = vld [vmem:[%s1940_s25 + $0x28] sm:$0xff]  ;;  %v831_v47 = vmax.f32 %v1977_v27, %v1987_v39 }
  0x9f   : > { %v1999_v46 = vld [vmem:[%s1940_s25 + $0x38] sm:$0xff]  ;;  %v832_v51 = vmax.f32 %v1980_v28, %v1990_v40  ;;  %v674_v52 = vmax.f32 %v671_v22, %v673_v29  ;;  %v845_v55 = vmax.f32 %v843_v30, %v1966_v12  ;;  %v2007_v58 = vld [vmem:[%s1940_s25 + $0x30] sm:$0xff]  ;;  %v381_v29 = vld [vmem:[%s350_s6 + $0x8] sm:$0xff] }
  0xa0   : > { %v847_v57 = vmax.f32 %v844_v37, %v846_v38  ;;  %v836_v59 = vsel %vm507_vm0, %v1999_v46, -inf  ;;  %v833_v60 = vmax.f32 %v831_v47, %v1993_v41  ;;  %v380_v30 = vld [vmem:[%s350_s6] sm:$0xff]  ;;  %v2674_v37 = vlaneseq }
  0xa1   : > { %v834_v0 = vmax.f32 %v832_v51, %v1996_v42  ;;  %675 = vmax.xlane.f32.xlu0 %v674_v52 }
  0xa2   : > { %v848_v13 = vmax.f32 %v845_v55, %v847_v57  ;;  %v835_v17 = vmax.f32 %v833_v60, %v2007_v58  ;;  %v2023_v38 = vand.u32 127, %v2674_v37 }
  0xa3   : > { %v837_v21 = vmax.f32 %v834_v0, %v836_v59 }
  0xa4   : > { %849 = vmax.xlane.f32.xlu1 %v848_v13  ;;  %v2026_v51 = vadd.s32 128, %v2023_v38  ;;  %v2029_v52 = vadd.s32 256, %v2023_v38 }
  0xa5   : > { %v838_v22 = vmax.f32 %v835_v17, %v837_v21  ;;  %v2053_v21 = vadd.s32 384, %v2023_v38 }
  0xa7   : > { %839 = vmax.xlane.f32.xlu0 %v838_v22  ;;  %2753 = vst [vmem:[#allocation19_spill] sm:$0xff] %v2053_v21 }
  0xb5   : > { %443 = vperm.xlu1 %1334, %v381_v29  }
  0xbd   : > { %440 = vperm.xlu0 %1333, %v380_v30  }
 0x126   : > { %v522_v47 = vpop.xlane.xlu1 %521 }
 0x127   : > { %v2032_v55 = vsub.f32 %v1814_v1, %v522_v47  ;;  %v2035_v57 = vsub.f32 %v1817_v2, %v522_v47  ;;  %v2038_v59 = vsub.f32 %v1820_v3, %v522_v47  ;;  %v2041_v60 = vsub.f32 %v1823_v4, %v522_v47 }
 0x128   : > { %v2044_v0 = vsub.f32 %v1826_v5, %v522_v47  ;;  %v2047_v13 = vsub.f32 %v1829_v6, %v522_v47  ;;  %v2050_v17 = vsub.f32 %v1834_v8, %v522_v47  ;;  %v2056_v2 = vsub.f32 %v1837_v9, %v522_v47 }
 0x129   : > { %2746 = vst [vmem:[#allocation12_spill] sm:$0xff] %v2032_v55  ;;  %2747 = vst [vmem:[#allocation13_spill] sm:$0xff] %v2035_v57  ;;  %v512_v1 = vpop.xlane.xlu0 %511  ;;  %v547_v3 = vmul.f32 0.33333334, %v2032_v55  ;;  %v548_v4 = vmul.f32 0.33333334, %v2035_v57 }
 0x12a   : > { %2748 = vst [vmem:[#allocation14_spill] sm:$0xff] %v2038_v59  ;;  %2749 = vst [vmem:[#allocation15_spill] sm:$0xff] %v2041_v60  ;;  %v549_v5 = vmul.f32 0.33333334, %v2038_v59  ;;  %v550_v22 = vmul.f32 0.33333334, %v2041_v60  ;;  %v2066_v37 = vsub.f32 %v1842_v11, %v512_v1  ;;  %v2069_v9 = vsub.f32 %v1848_v14, %v512_v1 }
 0x12b   : > { %2750 = vst [vmem:[#allocation16_spill] sm:$0xff] %v2044_v0  ;;  %2751 = vst [vmem:[#allocation17_spill] sm:$0xff] %v2047_v13  ;;  %v551_v6 = vmul.f32 0.33333334, %v2044_v0  ;;  %v552_v8 = vmul.f32 0.33333334, %v2047_v13  ;;  %v2072_v57 = vsub.f32 %v1851_v15, %v512_v1  ;;  %v2075_v60 = vsub.f32 %v1854_v16, %v512_v1 }
 0x12c   : > { %2752 = vst [vmem:[#allocation18_spill] sm:$0xff] %v2050_v17  ;;  %2754 = vst [vmem:[#allocation20_spill] sm:$0xff] %v2056_v2  ;;  %v553_v29 = vmul.f32 0.33333334, %v2050_v17  ;;  %v571_v30 = vmul.f32 1.442695, %v547_v3  ;;  %v2079_v11 = vsub.f32 %v1858_v18, %v512_v1  ;;  %v2082_v14 = vsub.f32 %v1861_v19, %v512_v1 }
 0x12d   : > { %v573_v47 = vmul.f32 1.442695, %v548_v4  ;;  %v575_v55 = vmul.f32 1.442695, %v549_v5  ;;  %v554_v0 = vmul.f32 0.33333334, %v2056_v2  ;;  %v2085_v15 = vsub.f32 %v1864_v20, %v512_v1 }
 0x12e   : > { %1335 = vpow2.f32 %v571_v30  ;;  %v577_v13 = vmul.f32 1.442695, %v550_v22  ;;  %v579_v17 = vmul.f32 1.442695, %v551_v6  ;;  %v581_v3 = vmul.f32 1.442695, %v552_v8 }
 0x12f   : > { %v583_v59 = vmul.f32 1.442695, %v553_v29  ;;  %1337 = vpow2.f32 %v573_v47  ;;  %v2088_v16 = vsub.f32 %v1872_v24, %v512_v1  ;;  %v539_v4 = vmul.f32 0.33333334, %v2066_v37 }
 0x130   : > { %1339 = vpow2.f32 %v575_v55  ;;  %v540_v5 = vmul.f32 0.33333334, %v2069_v9  ;;  %v541_v22 = vmul.f32 0.33333334, %v2072_v57  ;;  %v542_v18 = vmul.f32 0.33333334, %v2075_v60  ;;  %v686_v55 = vpop.xlane.xlu1 %685 }
 0x131   : > { %1341 = vpow2.f32 %v577_v13  ;;  %v585_v6 = vmul.f32 1.442695, %v554_v0  ;;  %v543_v19 = vmul.f32 0.33333334, %v2079_v11  ;;  %v2096_v8 = vadd.s32 512, %v2023_v38 }
 0x132   : > { %1343 = vpow2.f32 %v579_v17  ;;  %v544_v20 = vmul.f32 0.33333334, %v2082_v14  ;;  %v545_v24 = vmul.f32 0.33333334, %v2085_v15  ;;  %v555_v1 = vmul.f32 1.442695, %v539_v4 }
 0x133   : > { %2755 = vst [vmem:[#allocation21_spill] sm:$0xff] %v2096_v8  ;;  %1345 = vpow2.f32 %v581_v3  ;;  %v546_v29 = vmul.f32 0.33333334, %v2088_v16  ;;  %v557_v30 = vmul.f32 1.442695, %v540_v5  ;;  %v2102_v47 = vadd.s32 640, %v2023_v38 }
 0x134   : > { %1347 = vpow2.f32 %v583_v59  ;;  %v559_v0 = vmul.f32 1.442695, %v541_v22  ;;  %v561_v13 = vmul.f32 1.442695, %v542_v18  ;;  %v563_v2 = vmul.f32 1.442695, %v543_v19  ;;  %v2192_v10 = vpop.xlane.xlu1 %849 }
 0x135   : > { %2756 = vst [vmem:[#allocation22_spill] sm:$0xff] %v2102_v47  ;;  %1349 = vpow2.f32 %v585_v6  ;;  %v2105_v17 = vsub.f32 %v1875_v25, %v686_v55  ;;  %v2108_v23 = vsub.f32 %v1878_v26, %v686_v55  ;;  %v2111_v4 = vsub.f32 %v1885_v31, %v686_v55 }
 0x136   : > { %1351 = vpow2.f32 %v555_v1  ;;  %v565_v3 = vmul.f32 1.442695, %v544_v20  ;;  %v567_v5 = vmul.f32 1.442695, %v545_v24  ;;  %v2114_v12 = vsub.f32 %v1888_v32, %v686_v55 }
 0x137   : > { %2757 = vst [vmem:[#allocation23_spill] sm:$0xff] %v2105_v17  ;;  %2758 = vst [vmem:[#allocation24_spill] sm:$0xff] %v2108_v23  ;;  %1353 = vpow2.f32 %v557_v30  ;;  %v2119_v22 = vsub.f32 %v1891_v33, %v686_v55  ;;  %v2122_v25 = vsub.f32 %v1894_v34, %v686_v55  ;;  %v711_v26 = vmul.f32 0.33333334, %v2105_v17  ;;  %v676_v30 = vpop.xlane.xlu0 %675 }
 0x138   : > { %2759 = vst [vmem:[#allocation25_spill] sm:$0xff] %v2111_v4  ;;  %2760 = vst [vmem:[#allocation26_spill] sm:$0xff] %v2114_v12  ;;  %v2116_v59 = vpop.eup %1335  ;;  %1355 = vpow2.f32 %v559_v0  ;;  %v712_v31 = vmul.f32 0.33333334, %v2108_v23  ;;  %v713_v18 = vmul.f32 0.33333334, %v2111_v4  ;;  %v2131_v20 = vsub.f32 %v1897_v35, %v686_v55 }
 0x139   : > { %2761 = vst [vmem:[#allocation27_spill] sm:$0xff] %v2116_v59  ;;  %2762 = vst [vmem:[#allocation28_spill] sm:$0xff] %v2119_v22  ;;  %v714_v6 = vmul.f32 0.33333334, %v2114_v12  ;;  %v2128_v32 = vpop.eup %1337  ;;  %1357 = vpow2.f32 %v561_v13  ;;  %v569_v19 = vmul.f32 1.442695, %v546_v29  ;;  %v2137_v24 = vsub.f32 %v1900_v36, %v686_v55 }
 0x13a   : > { %2763 = vst [vmem:[#allocation29_spill] sm:$0xff] %v2122_v25  ;;  %2764 = vst [vmem:[#allocation30_spill] sm:$0xff] %v2128_v32  ;;  %v715_v33 = vmul.f32 0.33333334, %v2119_v22  ;;  %v2134_v34 = vpop.eup %1339  ;;  %1359 = vpow2.f32 %v563_v2  ;;  %v716_v1 = vmul.f32 0.33333334, %v2122_v25  ;;  %v2151_v25 = vsub.f32 %v1910_v43, %v676_v30 }
 0x13b   : > { %2765 = vst [vmem:[#allocation31_spill] sm:$0xff] %v2131_v20  ;;  %2766 = vst [vmem:[#allocation32_spill] sm:$0xff] %v2137_v24  ;;  %v2141_v0 = vadd.s32 768, %v2023_v38  ;;  %v2143_v12 = vpop.eup %1341  ;;  %1361 = vpow2.f32 %v565_v3  ;;  %v717_v35 = vmul.f32 0.33333334, %v2131_v20  ;;  %v2154_v23 = vsub.f32 %v1913_v44, %v676_v30 }
 0x13c   : > { %v735_v29 = vmul.f32 1.442695, %v711_v26  ;;  %v737_v13 = vmul.f32 1.442695, %v712_v31  ;;  %v2146_v22 = vpop.eup %1343  ;;  %1363 = vpow2.f32 %v567_v5  ;;  %v739_v2 = vmul.f32 1.442695, %v713_v18 }
 0x13d   : > { %2767 = vst [vmem:[#allocation33_spill] sm:$0xff] %v2141_v0  ;;  %v741_v4 = vmul.f32 1.442695, %v714_v6  ;;  %v743_v36 = vmul.f32 1.442695, %v715_v33  ;;  %v2148_v55 = vpop.eup %1345  ;;  %1365 = vpow2.f32 %v569_v19  ;;  %v2157_v3 = vsub.f32 %v1916_v45, %v676_v30 }
 0x13e   : > { %2768 = vst [vmem:[#allocation34_spill] sm:$0xff] %v2148_v55  ;;  %v2159_v26 = vpop.eup %1347  ;;  %v745_v31 = vmul.f32 1.442695, %v716_v1  ;;  %v2162_v5 = vsub.f32 %v1921_v48, %v676_v30  ;;  %v2165_v18 = vsub.f32 %v1924_v49, %v676_v30  ;;  %v2168_v6 = vsub.f32 %v1927_v50, %v676_v30 }
 0x13f   : > { %2769 = vst [vmem:[#allocation35_spill] sm:$0xff] %v2159_v26  ;;  %v2170_v43 = vpop.eup %1349  ;;  %1367 = vpow2.f32 %v735_v29  ;;  %v2173_v44 = vsub.f32 %v1932_v53, %v676_v30  ;;  %v2176_v45 = vsub.f32 %v1935_v54, %v676_v30  ;;  %v703_v19 = vmul.f32 0.33333334, %v2151_v25 }
 0x140   : > { %v2179_v33 = vpop.eup %1351  ;;  %1369 = vpow2.f32 %v737_v13  ;;  %v704_v48 = vmul.f32 0.33333334, %v2154_v23  ;;  %v705_v49 = vmul.f32 0.33333334, %v2157_v3  ;;  %v706_v50 = vmul.f32 0.33333334, %v2162_v5 }
 0x141   : > { %v2184_v1 = vpop.eup %1353  ;;  %1371 = vpow2.f32 %v739_v2  ;;  %v707_v53 = vmul.f32 0.33333334, %v2165_v18  ;;  %v708_v29 = vmul.f32 0.33333334, %v2168_v6  ;;  %v709_v54 = vmul.f32 0.33333334, %v2173_v44 }
 0x142   : > { %v2189_v30 = vpop.eup %1355  ;;  %1373 = vpow2.f32 %v741_v4  ;;  %v710_v13 = vmul.f32 0.33333334, %v2176_v45  ;;  %v719_v20 = vmul.f32 1.442695, %v703_v19  ;;  %v721_v17 = vmul.f32 1.442695, %v704_v48  ;;  %v2206_v19 = vpop.xlane.xlu0 %839 }
 0x143   : > { %v2194_v26 = vpop.eup %1357  ;;  %1375 = vpow2.f32 %v743_v36  ;;  %v723_v0 = vmul.f32 1.442695, %v705_v49  ;;  %v2197_v2 = vadd.s32 896, %v2023_v38  ;;  %v2202_v55 = vmul.f32 0.33333334, %v2137_v24 }
 0x144   : > { %2770 = vst [vmem:[#allocation36_spill] sm:$0xff] %v2194_v26  ;;  %v2199_v47 = vpop.eup %1359  ;;  %1377 = vpow2.f32 %v745_v31  ;;  %v2204_v4 = vmul.f32 1.442695, %v717_v35  ;;  %v725_v8 = vmul.f32 1.442695, %v706_v50  ;;  %v859_v36 = vsub.f32 %v1943_v56, %v2192_v10 }
 0x145   : > { %2771 = vst [vmem:[#allocation37_spill] sm:$0xff] %v2197_v2  ;;  %2772 = vst [vmem:[#allocation38_spill] sm:$0xff] %v2199_v47  ;;  %v2208_v48 = vpop.eup %1361  ;;  %1379 = vpow2.f32 %v719_v20  ;;  %v727_v21 = vmul.f32 1.442695, %v707_v53  ;;  %v860_v49 = vsub.f32 %v1950_v61, %v2192_v10  ;;  %v729_v24 = vmul.f32 1.442695, %v708_v29 }
 0x146   : > { %2773 = vst [vmem:[#allocation39_spill] sm:$0xff] %v2202_v55  ;;  %2774 = vst [vmem:[#allocation40_spill] sm:$0xff] %v2204_v4  ;;  %v2214_v2 = vpop.eup %1363  ;;  %1381 = vpow2.f32 %v721_v17  ;;  %v731_v31 = vmul.f32 1.442695, %v709_v54  ;;  %v733_v35 = vmul.f32 1.442695, %v710_v13  ;;  %v851_v20 = vsub.f32 %v1977_v27, %v2206_v19 }
 0x147   : > { %2775 = vst [vmem:[#allocation41_spill] sm:$0xff] %v2208_v48  ;;  %2776 = vst [vmem:[#allocation42_spill] sm:$0xff] %v2214_v2  ;;  %v2216_v55 = vpop.eup %1365  ;;  %1383 = vpow2.f32 %v723_v0  ;;  %v2218_v50 = vmul.f32 0.33333334, %v859_v36  ;;  %v2220_v4 = vmul.f32 0.33333334, %v860_v49  ;;  %v861_v56 = vsub.f32 %v1953_v62, %v2192_v10 }
 0x148   : > { %2777 = vst [vmem:[#allocation43_spill] sm:$0xff] %v2216_v55  ;;  %1385 = vpow2.f32 %v725_v8  ;;  %v862_v61 = vsub.f32 %v1956_v63, %v2192_v10  ;;  %v852_v17 = vsub.f32 %v1980_v28, %v2206_v19  ;;  %v863_v0 = vsub.f32 %v1960_v7, %v2192_v10 }
 0x149   : > { %2778 = vst [vmem:[#allocation44_spill] sm:$0xff] %v2218_v50  ;;  %2779 = vst [vmem:[#allocation45_spill] sm:$0xff] %v2220_v4  ;;  %v2230_v53 = vpop.eup %1367  ;;  %1387 = vpow2.f32 %v727_v21  ;;  %v899_v29 = vmul.f32 1.442695, %v2218_v50  ;;  %v901_v27 = vmul.f32 1.442695, %v2220_v4  ;;  %v853_v62 = vsub.f32 %v1987_v39, %v2206_v19 }
 0x14a   : > { %2780 = vst [vmem:[#allocation46_spill] sm:$0xff] %v2230_v53  ;;  %v2236_v8 = vpop.eup %1369  ;;  %1389 = vpow2.f32 %v729_v24  ;;  %v854_v63 = vsub.f32 %v1990_v40, %v2206_v19  ;;  %v855_v28 = vsub.f32 %v1993_v41, %v2206_v19  ;;  %v2246_v7 = vmul.f32 0.33333334, %v851_v20 }
 0x14b   : > { %2781 = vst [vmem:[#allocation47_spill] sm:$0xff] %v2236_v8  ;;  %v2244_v21 = vpop.eup %1371  ;;  %1391 = vpow2.f32 %v731_v31  ;;  %v2248_v54 = vmul.f32 0.33333334, %v852_v17  ;;  %v643_v13 = vadd.f32 %v2184_v1, %v2179_v33  ;;  %v2254_v39 = vmul.f32 0.33333334, %v853_v62 }
 0x14c   : > { %2782 = vst [vmem:[#allocation48_spill] sm:$0xff] %v2244_v21  ;;  %v2252_v24 = vpop.eup %1373  ;;  %1393 = vpow2.f32 %v733_v35  ;;  %v2256_v36 = vmul.f32 0.33333334, %v854_v63  ;;  %v2258_v40 = vmul.f32 0.33333334, %v855_v28  ;;  %v856_v62 = vsub.f32 %v1996_v42, %v2206_v19 }
 0x14d   : > { %2783 = vst [vmem:[#allocation49_spill] sm:$0xff] %v2252_v24  ;;  %v2260_v41 = vpop.eup %1375  ;;  %1395 = vpow2.f32 %v899_v29  ;;  %v883_v49 = vmul.f32 1.442695, %v2246_v7  ;;  %v885_v31 = vmul.f32 1.442695, %v2248_v54  ;;  %v644_v20 = vadd.f32 %v2189_v30, %v643_v13 }
 0x14e   : > { %2784 = vst [vmem:[#allocation50_spill] sm:$0xff] %v2260_v41  ;;  %v2265_v17 = vpop.eup %1377  ;;  %v2267_v4 = vmul.f32 0.33333334, %v861_v56  ;;  %1397 = vpow2.f32 %v901_v27  ;;  %v887_v35 = vmul.f32 1.442695, %v2254_v39  ;;  %v857_v28 = vsub.f32 %v2007_v58, %v2206_v19 }
 0x14f   : > { %2785 = vst [vmem:[#allocation51_spill] sm:$0xff] %v2265_v17  ;;  %v2272_v63 = vpop.eup %1379  ;;  %1399 = vpow2.f32 %v883_v49  ;;  %v645_v29 = vadd.f32 %v2194_v26, %v644_v20  ;;  %v858_v13 = vsub.f32 %v1999_v46, %v2206_v19  ;;  %v872_v56 = vmul.f32 0.33333334, %v856_v62 }
 0x150   : > { %2786 = vst [vmem:[#allocation52_spill] sm:$0xff] %v2267_v4  ;;  %2787 = vst [vmem:[#allocation53_spill] sm:$0xff] %v2272_v63  ;;  %v2279_v50 = vpop.eup %1381  ;;  %1401 = vpow2.f32 %v885_v31  ;;  %v889_v27 = vmul.f32 1.442695, %v2256_v36  ;;  %v891_v17 = vmul.f32 1.442695, %v2258_v40 }
 0x151   : > { %2788 = vst [vmem:[#allocation54_spill] sm:$0xff] %v2279_v50  ;;  %v2283_v42 = vpop.eup %1383  ;;  %v646_v49 = vadd.f32 %v2199_v47, %v645_v29  ;;  %v807_v20 = vadd.f32 %v2279_v50, %v2272_v63  ;;  %v873_v41 = vmul.f32 0.33333334, %v857_v28  ;;  %v874_v58 = vmul.f32 0.33333334, %v858_v13 }
 0x152   : > { %2789 = vst [vmem:[#allocation55_spill] sm:$0xff] %v2283_v42  ;;  %v2288_v24 = vpop.eup %1385  ;;  %v2290_v46 = vmul.f32 0.33333334, %v862_v61  ;;  %v2292_v19 = vmul.f32 0.33333334, %v863_v0  ;;  %1403 = vpow2.f32 %v887_v35  ;;  %v649_v61 = vsel %vm507_vm0, %v2216_v55, 0.0 }
 0x153   : > { %2790 = vst [vmem:[#allocation56_spill] sm:$0xff] %v2288_v24  ;;  %v893_v31 = vmul.f32 1.442695, %v872_v56  ;;  %v2294_v62 = vpop.eup %1387  ;;  %v647_v21 = vadd.f32 %v2208_v48, %v646_v49  ;;  %v808_v8 = vadd.f32 %v2283_v42, %v807_v20  ;;  %1405 = vpow2.f32 %v889_v27 }
 0x154   : > { %2791 = vst [vmem:[#allocation57_spill] sm:$0xff] %v2294_v62  ;;  %v895_v29 = vmul.f32 1.442695, %v873_v41  ;;  %v2298_v53 = vpop.eup %1389  ;;  %v2301_v28 = vmul.f32 1.442695, %v2267_v4  ;;  %1407 = vpow2.f32 %v891_v17  ;;  %v2311_v27 = vadd.f32 %v2151_v25, %v2066_v37 }
 0x155   : > { %2792 = vst [vmem:[#allocation58_spill] sm:$0xff] %v2298_v53  ;;  %v897_v0 = vmul.f32 1.442695, %v874_v58  ;;  %v2305_v35 = vpop.eup %1391  ;;  %v648_v13 = vadd.f32 %v2214_v2, %v647_v21  ;;  %v809_v49 = vadd.f32 %v2288_v24, %v808_v8  ;;  %1409 = vpow2.f32 %v893_v31 }
 0x156   : > { %2793 = vst [vmem:[#allocation59_spill] sm:$0xff] %v2305_v35  ;;  %v2313_v20 = vpop.eup %1393  ;;  %1411 = vpow2.f32 %v895_v29  ;;  %v2317_v4 = vadd.f32 %v2154_v23, %v2069_v9  ;;  %v2321_v17 = vadd.f32 %v2157_v3, %v2072_v57  ;;  %v2325_v21 = vadd.f32 %v2162_v5, %v2075_v60 }
 0x157   : > { %2794 = vst [vmem:[#allocation60_spill] sm:$0xff] %v2313_v20  ;;  %v2327_v8 = vpop.eup %1395  ;;  %v650_v31 = vadd.f32 %v649_v61, %v648_v13  ;;  %v810_v37 = vadd.f32 %v2294_v62, %v809_v49  ;;  %1413 = vpow2.f32 %v897_v0  ;;  %v2332_v25 = vadd.f32 %v2165_v18, %v2079_v11 }
 0x158   : > { %v2334_v23 = vpop.eup %1397  ;;  %v813_v57 = vsel %vm507_vm0, %v2313_v20, 0.0  ;;  %v2340_v9 = vadd.f32 %v2168_v6, %v2082_v14  ;;  %v2344_v60 = vadd.f32 %v2173_v44, %v2085_v15  ;;  %v2348_v3 = vadd.f32 %v2176_v45, %v2088_v16 }
 0x159   : > { %2795 = vst [vmem:[#allocation61_spill] sm:$0xff] %v2334_v23  ;;  %v1400_v5 = vpop.eup %1399  ;;  %651 = vadd.xlane.f32.xlu0 %v650_v31  ;;  %v811_v11 = vadd.f32 %v2298_v53, %v810_v37  ;;  %v997_v18 = vmul.f32 2.0, %v2246_v7  ;;  %v998_v29 = vmul.f32 2.0, %v2248_v54  ;;  %v999_v61 = vmul.f32 2.0, %v2254_v39 }
 0x15a   : > { %v1402_v14 = vpop.eup %1401  ;;  %v1000_v6 = vmul.f32 2.0, %v2256_v36  ;;  %v1001_v15 = vmul.f32 2.0, %v2258_v40  ;;  %v1002_v44 = vmul.f32 2.0, %v872_v56  ;;  %v1003_v0 = vmul.f32 2.0, %v873_v41 }
 0x15b   : > { %v812_v16 = vadd.f32 %v2305_v35, %v811_v11  ;;  %v915_v45 = vadd.f32 %v1402_v14, %v1400_v5  ;;  %v1004_v13 = vmul.f32 2.0, %v874_v58  ;;  %v1013_v49 = vmul.f32 0.33333334, %v2311_v27 }
 0x15c   : > { %v1404_v31 = vpop.eup %1403  ;;  %v1014_v7 = vmul.f32 0.33333334, %v2317_v4  ;;  %v1015_v54 = vmul.f32 0.33333334, %v2321_v17  ;;  %v1016_v39 = vmul.f32 0.33333334, %v2325_v21  ;;  %v653_v36 = vadd.f32 %v2128_v32, %v2116_v59 }
 0x15d   : > { %v1406_v37 = vpop.eup %1405  ;;  %v814_v40 = vadd.f32 %v813_v57, %v812_v16  ;;  %v916_v56 = vadd.f32 %v1404_v31, %v915_v45  ;;  %v1017_v41 = vmul.f32 0.33333334, %v2332_v25  ;;  %v1029_v11 = vsub.f32 %v997_v18, %v1013_v49  ;;  %v441_v57 = vpop.permute.xlu0 %440 }
 0x15e   : > { %v1408_v20 = vpop.eup %1407  ;;  %v1018_v58 = vmul.f32 0.33333334, %v2340_v9  ;;  %v1019_v35 = vmul.f32 0.33333334, %v2344_v60  ;;  %v1020_v53 = vmul.f32 0.33333334, %v2348_v3  ;;  %v1030_v62 = vsub.f32 %v998_v29, %v1014_v7 }
 0x15f   : > { %v1410_v24 = vpop.eup %1409  ;;  %815 = vadd.xlane.f32.xlu0 %v814_v40  ;;  %v917_v42 = vadd.f32 %v1406_v37, %v916_v56  ;;  %v1031_v55 = vsub.f32 %v999_v61, %v1015_v54  ;;  %v1032_v50 = vsub.f32 %v1000_v6, %v1016_v39  ;;  %v1045_v32 = vmul.f32 %v1400_v5, %v1029_v11 }
 0x160   : > { %v1412_v59 = vpop.eup %1411  ;;  %v1033_v16 = vsub.f32 %v1001_v15, %v1017_v41  ;;  %v1034_v45 = vsub.f32 %v1002_v44, %v1018_v58  ;;  %v1035_v63 = vsub.f32 %v1003_v0, %v1019_v35  ;;  %v1046_v18 = vmul.f32 %v1402_v14, %v1030_v62  ;;  %v2800_v15 = vld [vmem:[#allocation33_spill] sm:$0xff] }
 0x161   : > { %v1414_v49 = vpop.eup %1413  ;;  %v918_v2 = vadd.f32 %v1408_v20, %v917_v42  ;;  %v1036_v48 = vsub.f32 %v1004_v13, %v1020_v53  ;;  %v1047_v47 = vmul.f32 %v1404_v31, %v1031_v55  ;;  %v654_v26 = vadd.f32 %v2134_v34, %v653_v36  ;;  %v2801_v44 = vld [vmem:[#allocation37_spill] sm:$0xff]  ;;  %v2802_v13 = vld [vmem:[#allocation35_spill] sm:$0xff] }
 0x162   : > { %v1048_v23 = vmul.f32 %v1406_v37, %v1032_v50  ;;  %v1049_v29 = vmul.f32 %v1408_v20, %v1033_v16  ;;  %v1050_v7 = vmul.f32 %v1410_v24, %v1034_v45  ;;  %v1061_v40 = vadd.f32 %v1046_v18, %v1045_v32  ;;  %v2799_v20 = vld [vmem:[#allocation22_spill] sm:$0xff] }
 0x163   : > { %v919_v56 = vadd.f32 %v1410_v24, %v918_v2  ;;  %v1051_v61 = vmul.f32 %v1412_v59, %v1035_v63  ;;  %v655_v5 = vadd.f32 %v2143_v12, %v654_v26  ;;  %vm445_vm1 = vcmp.eq.s32.totalorder %v2023_v38, %v441_v57  ;;  %v2796_v2 = vld [vmem:[#allocation19_spill] sm:$0xff]  ;;  %v2797_v26 = vld [vmem:[#allocation21_spill] sm:$0xff] }
 0x164   : > { %v921_v6 = vsel %vm507_vm0, %v1414_v49, 0.0  ;;  %v1052_v35 = vmul.f32 %v1414_v49, %v1036_v48  ;;  %v1062_v62 = vadd.f32 %v1061_v40, %v1047_v47  ;;  %vm446_vm2 = vcmp.eq.s32.totalorder %v2026_v51, %v441_v57  ;;  %v2798_v47 = vld [vmem:[#allocation34_spill] sm:$0xff] }
 0x165   : > { %v920_v53 = vadd.f32 %v1412_v59, %v919_v56  ;;  %v656_v55 = vadd.f32 %v2146_v22, %v655_v5  ;;  %v659_v50 = vsel %vm507_vm0, %v2170_v43, 0.0  ;;  %vm447_vm3 = vcmp.eq.s32.totalorder %v2029_v52, %v441_v57 }
 0x166   : > { %v1063_v32 = vadd.f32 %v1062_v62, %v1048_v23  ;;  %vm448_vm4 = vcmp.eq.s32.totalorder %v2796_v2, %v441_v57  ;;  %vm449_vm5 = vcmp.eq.s32.totalorder %v2797_v26, %v441_v57  ;;  %v1589_v24 = vmov 0.0  }
 0x167   : > { %v1262_v63 = vsel %vm445_vm1, 1.0, %v1589_v24  ;;  %v922_v48 = vadd.f32 %v921_v6, %v920_v53  ;;  %v657_v42 = vadd.f32 %v2798_v47, %v656_v55  ;;  %vm450_vm6 = vcmp.eq.s32.totalorder %v2799_v20, %v441_v57 }
 0x168   : > { %v1263_v59 = vsel %vm446_vm2, 1.0, %v1589_v24  ;;  %v1064_v14 = vadd.f32 %v1063_v32, %v1049_v29  ;;  %vm451_vm7 = vcmp.eq.s32.totalorder %v2800_v15, %v441_v57  ;;  %vm452_vm8 = vcmp.eq.s32.totalorder %v2801_v44, %v441_v57  ;;  %v2804_v57 = vld [vmem:[#allocation10_spill] sm:$0xff] }
 0x169   : > { %v1264_v23 = vsel %vm447_vm3, 1.0, %v1589_v24  ;;  %923 = vadd.xlane.f32.xlu1 %v922_v48  ;;  %v1067_v0 = vsel %vm507_vm0, %v1052_v35, 0.0  ;;  %v658_v31 = vadd.f32 %v2802_v13, %v657_v42  ;;  %v1265_v54 = vsel %vm448_vm4, 1.0, %v1589_v24  ;;  %v2806_v48 = vld [vmem:[#allocation40_spill] sm:$0xff] }
 0x16a   : > { %v959_v39 = vmul.f32 %v1262_v63, %v2311_v27  ;;  %v1065_v36 = vadd.f32 %v1064_v14, %v1050_v7  ;;  %v1266_v37 = vsel %vm449_vm5, 1.0, %v1589_v24  ;;  %v1267_v41 = vsel %vm450_vm6, 1.0, %v1589_v24  ;;  %v2803_v7 = vld [vmem:[#allocation9_spill] sm:$0xff] }
 0x16b   : > { %v960_v11 = vmul.f32 %v1263_v59, %v2317_v4  ;;  %v660_v58 = vadd.f32 %v659_v50, %v658_v31  ;;  %v1268_v16 = vsel %vm451_vm7, 1.0, %v1589_v24  ;;  %v1269_v45 = vsel %vm452_vm8, 1.0, %v1589_v24  ;;  %v2805_v4 = vld [vmem:[#allocation11_spill] sm:$0xff] }
 0x16c   : > { %v961_v18 = vmul.f32 %v1264_v23, %v2321_v17  ;;  %v1066_v49 = vadd.f32 %v1065_v36, %v1051_v61  ;;  %v962_v29 = vmul.f32 %v1265_v54, %v2325_v21  ;;  %v864_v40 = vsub.f32 %v2803_v7, %v2192_v10  ;;  %v2808_v36 = vld [vmem:[#allocation61_spill] sm:$0xff] }
 0x16d   : > { %v975_v27 = vadd.f32 %v960_v11, %v959_v39  ;;  %661 = vadd.xlane.f32.xlu1 %v660_v58  ;;  %v865_v56 = vsub.f32 %v2804_v57, %v2192_v10  ;;  %v866_v5 = vsub.f32 %v2805_v4, %v2192_v10  ;;  %1415 = vpow2.f32 %v2301_v28  ;;  %v2810_v58 = vld [vmem:[#allocation38_spill] sm:$0xff]  ;;  %v2813_v57 = vld [vmem:[#allocation53_spill] sm:$0xff] }
 0x16e   : > { %v905_v6 = vmul.f32 1.442695, %v2290_v46  ;;  %v1068_v35 = vadd.f32 %v1067_v0, %v1066_v49  ;;  %v963_v17 = vmul.f32 %v1266_v37, %v2332_v25  ;;  %v2407_v21 = vmul.f32 0.33333334, %v864_v40  ;;  %v2814_v4 = vld [vmem:[#allocation54_spill] sm:$0xff] }
 0x16f   : > { %v976_v61 = vadd.f32 %v975_v27, %v961_v18  ;;  %v2409_v62 = vmul.f32 0.33333334, %v865_v56  ;;  %v2411_v53 = vmul.f32 0.33333334, %v866_v5  ;;  %v907_v55 = vmul.f32 1.442695, %v2292_v19 }
 0x170   : > { %1417 = vpow2.f32 %v905_v6  ;;  %1069 = vadd.xlane.f32.xlu0 %v1068_v35  ;;  %v966_v10 = vmul.f32 %v1269_v45, %v2348_v3  ;;  %v909_v28 = vmul.f32 1.442695, %v2407_v21  ;;  %v587_v32 = vmul.f32 %v2179_v33, %v2179_v33  ;;  %v2807_v3 = vld [vmem:[#allocation39_spill] sm:$0xff]  ;;  %v2811_v18 = vld [vmem:[#allocation41_spill] sm:$0xff] }
 0x171   : > { %v977_v50 = vadd.f32 %v976_v61, %v962_v29  ;;  %1419 = vpow2.f32 %v907_v55  ;;  %v911_v25 = vmul.f32 1.442695, %v2409_v62  ;;  %v588_v63 = vmul.f32 %v2184_v1, %v2184_v1  ;;  %v2812_v29 = vld [vmem:[#allocation42_spill] sm:$0xff]  ;;  %v2815_v35 = vld [vmem:[#allocation43_spill] sm:$0xff] }
 0x172   : > { %1421 = vpow2.f32 %v2806_v48  ;;  %v964_v42 = vmul.f32 %v1267_v41, %v2340_v9  ;;  %v913_v14 = vmul.f32 1.442695, %v2411_v53  ;;  %v749_v23 = vmul.f32 1.442695, %v2807_v3  ;;  %v2809_v9 = vld [vmem:[#allocation36_spill] sm:$0xff]  ;;  %v2816_v61 = vld [vmem:[#allocation55_spill] sm:$0xff] }
 0x173   : > { %v978_v59 = vadd.f32 %v977_v50, %v963_v17  ;;  %v965_v0 = vmul.f32 %v1268_v16, %v2344_v60  ;;  %1423 = vpow2.f32 %v909_v28  ;;  %v589_v31 = vmul.f32 %v2189_v30, %v2189_v30  ;;  %v2817_v3 = vld [vmem:[#allocation56_spill] sm:$0xff] }
 0x174   : > { %v981_v39 = vsel %vm507_vm0, %v966_v10, 0.0  ;;  %v925_v37 = vadd.f32 %v2808_v36, %v2327_v8  ;;  %v603_v11 = vmul.f32 %v2179_v33, %v587_v32  ;;  %1425 = vpow2.f32 %v911_v25 }
 0x175   : > { %v979_v54 = vadd.f32 %v978_v59, %v964_v42  ;;  %v590_v41 = vmul.f32 %v2809_v9, %v2809_v9  ;;  %v591_v45 = vmul.f32 %v2810_v58, %v2810_v58  ;;  %v604_v60 = vmul.f32 %v2184_v1, %v588_v63 }
 0x176   : > { %1427 = vpow2.f32 %v913_v14  ;;  %v592_v49 = vmul.f32 %v2811_v18, %v2811_v18  ;;  %v593_v27 = vmul.f32 %v2812_v29, %v2812_v29  ;;  %v605_v33 = vmul.f32 %v2189_v30, %v589_v31 }
 0x177   : > { %v980_v16 = vadd.f32 %v979_v54, %v965_v0  ;;  %v2441_v7 = vpop.eup %1415  ;;  %v619_v40 = vadd.f32 %v604_v60, %v603_v11  ;;  %v751_v56 = vmul.f32 %v2813_v57, %v2813_v57  ;;  %v752_v5 = vmul.f32 %v2814_v4, %v2814_v4 }
 0x178   : > { %v926_v6 = vadd.f32 %v2441_v7, %v925_v37  ;;  %v594_v17 = vmul.f32 %v2815_v35, %v2815_v35  ;;  %v753_v55 = vmul.f32 %v2816_v61, %v2816_v61  ;;  %1429 = vpow2.f32 %v749_v23 }
 0x179   : > { %v982_v1 = vadd.f32 %v981_v39, %v980_v16  ;;  %v606_v30 = vmul.f32 %v2809_v9, %v590_v41  ;;  %v620_v50 = vadd.f32 %v619_v40, %v605_v33  ;;  %v607_v32 = vmul.f32 %v2810_v58, %v591_v45  ;;  %v2818_v39 = vld [vmem:[#allocation57_spill] sm:$0xff]  ;;  %v2819_v45 = vld [vmem:[#allocation27_spill] sm:$0xff]  ;;  %v2820_v16 = vld [vmem:[#allocation30_spill] sm:$0xff] }
 0x17a   : > { %v2453_v10 = vpop.eup %1417  ;;  %v767_v25 = vmul.f32 %v2813_v57, %v751_v56  ;;  %v768_v63 = vmul.f32 %v2814_v4, %v752_v5  ;;  %v608_v42 = vmul.f32 %v2811_v18, %v592_v49  ;;  %v609_v59 = vmul.f32 %v2812_v29, %v593_v27  ;;  %v2821_v29 = vld [vmem:[#allocation58_spill] sm:$0xff]  ;;  %v2822_v33 = vld [vmem:[#allocation59_spill] sm:$0xff]  ;;  %v2823_v5 = vld [vmem:[#allocation60_spill] sm:$0xff] }
 0x17b   : > { %983 = vadd.xlane.f32.xlu0 %v982_v1  ;;  %v927_v28 = vadd.f32 %v2453_v10, %v926_v6  ;;  %v2460_v48 = vpop.eup %1419  ;;  %v621_v14 = vadd.f32 %v620_v50, %v606_v30  ;;  %v754_v23 = vmul.f32 %v2817_v3, %v2817_v3  ;;  %v610_v54 = vmul.f32 %v2815_v35, %v594_v17 }
 0x17c   : > { %v2466_v0 = vpop.eup %1421  ;;  %v755_v37 = vmul.f32 %v2818_v39, %v2818_v39  ;;  %v769_v11 = vmul.f32 %v2816_v61, %v753_v55  ;;  %v783_v58 = vadd.f32 %v768_v63, %v767_v25  ;;  %v595_v60 = vmul.f32 %v2819_v45, %v2819_v45 }
 0x17d   : > { %v928_v31 = vadd.f32 %v2460_v48, %v927_v28  ;;  %v2473_v9 = vpop.eup %1423  ;;  %v622_v41 = vadd.f32 %v621_v14, %v607_v32  ;;  %v596_v18 = vmul.f32 %v2820_v16, %v2820_v16  ;;  %v756_v27 = vmul.f32 %v2821_v29, %v2821_v29 }
 0x17e   : > { %v757_v40 = vmul.f32 %v2822_v33, %v2822_v33  ;;  %v597_v57 = vmul.f32 %v2134_v34, %v2134_v34  ;;  %v2486_v56 = vpop.eup %1425  ;;  %v758_v1 = vmul.f32 %v2823_v5, %v2823_v5  ;;  %v770_v6 = vmul.f32 %v2817_v3, %v754_v23 }
 0x17f   : > { %v929_v49 = vadd.f32 %v2473_v9, %v928_v31  ;;  %v623_v4 = vadd.f32 %v622_v41, %v608_v42  ;;  %v784_v35 = vadd.f32 %v783_v58, %v769_v11  ;;  %v625_v55 = vsel %vm507_vm0, %v610_v54, 0.0 }
 0x180   : > { %v2491_v17 = vpop.eup %1427  ;;  %v771_v30 = vmul.f32 %v2818_v39, %v755_v37  ;;  %v598_v50 = vmul.f32 %v2143_v12, %v2143_v12  ;;  %v611_v25 = vmul.f32 %v2819_v45, %v595_v60  ;;  %v612_v63 = vmul.f32 %v2820_v16, %v596_v18  ;;  %v2824_v45 = vld [vmem:[#allocation46_spill] sm:$0xff]  ;;  %v2825_v60 = vld [vmem:[#allocation47_spill] sm:$0xff] }
 0x181   : > { %v930_v61 = vadd.f32 %v2486_v56, %v929_v49  ;;  %v931_v28 = vsel %vm507_vm0, %v2491_v17, 0.0  ;;  %v785_v32 = vadd.f32 %v784_v35, %v770_v6  ;;  %v624_v14 = vadd.f32 %v623_v4, %v609_v59  ;;  %v2826_v49 = vld [vmem:[#allocation48_spill] sm:$0xff] }
 0x182   : > { %v599_v3 = vmul.f32 %v2146_v22, %v2146_v22  ;;  %v613_v23 = vmul.f32 %v2134_v34, %v597_v57  ;;  %v2505_v31 = vpop.eup %1429  ;;  %v772_v54 = vmul.f32 %v2821_v29, %v756_v27  ;;  %v773_v39 = vmul.f32 %v2822_v33, %v757_v40  ;;  %v2827_v27 = vld [vmem:[#allocation49_spill] sm:$0xff] }
 0x183   : > { %v932_v42 = vadd.f32 %v931_v28, %v930_v61  ;;  %v774_v37 = vmul.f32 %v2823_v5, %v758_v1  ;;  %v786_v11 = vadd.f32 %v785_v32, %v771_v30  ;;  %v614_v41 = vmul.f32 %v2143_v12, %v598_v50  ;;  %v2828_v30 = vld [vmem:[#allocation50_spill] sm:$0xff] }
 0x184   : > { %v629_v58 = vadd.f32 %v612_v63, %v611_v25  ;;  %v759_v59 = vmul.f32 %v2824_v45, %v2824_v45  ;;  %v760_v16 = vmul.f32 %v2825_v60, %v2825_v60  ;;  %v600_v18 = vmul.f32 %v2798_v47, %v2798_v47 }
 0x185   : > { %933 = vadd.xlane.f32.xlu1 %v932_v42  ;;  %v787_v34 = vadd.f32 %v786_v11, %v772_v54  ;;  %v761_v29 = vmul.f32 %v2826_v49, %v2826_v49  ;;  %v762_v33 = vmul.f32 %v2827_v27, %v2827_v27  ;;  %v626_v40 = vadd.f32 %v625_v55, %v624_v14  ;;  %v2829_v54 = vld [vmem:[#allocation51_spill] sm:$0xff] }
 0x186   : > { %v601_v12 = vmul.f32 %v2802_v13, %v2802_v13  ;;  %v615_v57 = vmul.f32 %v2146_v22, %v599_v3  ;;  %v630_v4 = vadd.f32 %v629_v58, %v613_v23  ;;  %v602_v1 = vmul.f32 %v2170_v43, %v2170_v43 }
 0x187   : > { %v788_v5 = vadd.f32 %v787_v34, %v773_v39  ;;  %v775_v6 = vmul.f32 %v2824_v45, %v759_v59  ;;  %v776_v35 = vmul.f32 %v2825_v60, %v760_v16  ;;  %v763_v50 = vmul.f32 %v2828_v30, %v2828_v30  ;;  %v2830_v59 = vld [vmem:[#allocation12_spill] sm:$0xff]  ;;  %v2831_v16 = vld [vmem:[#allocation23_spill] sm:$0xff] }
 0x188   : > { %v631_v61 = vadd.f32 %v630_v4, %v614_v41  ;;  %v777_v55 = vmul.f32 %v2826_v49, %v761_v29  ;;  %v789_v28 = vsel %vm507_vm0, %v774_v37, 0.0  ;;  %v616_v22 = vmul.f32 %v2798_v47, %v600_v18  ;;  %v2835_v4 = vld [vmem:[#allocation25_spill] sm:$0xff] }
 0x189   : > { %627 = vadd.xlane.f32.xlu1 %v626_v40  ;;  %v778_v32 = vmul.f32 %v2827_v27, %v762_v33  ;;  %v790_v25 = vadd.f32 %v789_v28, %v788_v5  ;;  %v793_v42 = vadd.f32 %v776_v35, %v775_v6  ;;  %v817_v14 = vadd.f32 %v2825_v60, %v2824_v45  ;;  %v2833_v60 = vld [vmem:[#allocation24_spill] sm:$0xff] }
 0x18a   : > { %v632_v63 = vadd.f32 %v631_v61, %v615_v57  ;;  %v617_v3 = vmul.f32 %v2802_v13, %v601_v12  ;;  %v618_v23 = vmul.f32 %v2170_v43, %v602_v1  ;;  %v764_v39 = vmul.f32 %v2829_v54, %v2829_v54  ;;  %v2832_v13 = vld [vmem:[#allocation13_spill] sm:$0xff]  ;;  %v2834_v57 = vld [vmem:[#allocation14_spill] sm:$0xff]  ;;  %v2836_v61 = vld [vmem:[#allocation15_spill] sm:$0xff] }
 0x18b   : > { %v766_v37 = vmul.f32 %v2505_v31, %v2505_v31  ;;  %v779_v11 = vmul.f32 %v2828_v30, %v763_v50  ;;  %v794_v41 = vadd.f32 %v793_v42, %v777_v55  ;;  %v818_v58 = vadd.f32 %v2826_v49, %v817_v14  ;;  %v2837_v50 = vld [vmem:[#allocation26_spill] sm:$0xff]  ;;  %v2838_v28 = vld [vmem:[#allocation44_spill] sm:$0xff] }
 0x18c   : > { %v633_v47 = vadd.f32 %v632_v63, %v616_v22  ;;  %v2546_v45 = vadd.f32 %v2831_v16, %v2830_v59  ;;  %v2550_v43 = vadd.f32 %v2833_v60, %v2832_v13  ;;  %v765_v18 = vmul.f32 %v2466_v0, %v2466_v0  ;;  %v2839_v22 = vld [vmem:[#allocation45_spill] sm:$0xff] }
 0x18d   : > { %791 = vadd.xlane.f32.xlu1 %v790_v25  ;;  %v795_v29 = vadd.f32 %v794_v41, %v778_v32  ;;  %v819_v33 = vadd.f32 %v2827_v27, %v818_v58  ;;  %v635_v40 = vsel %vm507_vm0, %v618_v23, 0.0  ;;  %v780_v12 = vmul.f32 %v2829_v54, %v764_v39  ;;  %v2840_v39 = vld [vmem:[#allocation16_spill] sm:$0xff]  ;;  %v2843_v16 = vld [vmem:[#allocation17_spill] sm:$0xff] }
 0x18e   : > { %v634_v34 = vadd.f32 %v633_v47, %v617_v3  ;;  %v782_v49 = vmul.f32 %v2505_v31, %v766_v37  ;;  %v2560_v5 = vadd.f32 %v2835_v4, %v2834_v57  ;;  %v2565_v55 = vadd.f32 %v2837_v50, %v2836_v61  ;;  %v2841_v37 = vld [vmem:[#allocation28_spill] sm:$0xff]  ;;  %v2844_v13 = vld [vmem:[#allocation29_spill] sm:$0xff]  ;;  %v444_v4 = vpop.permute.xlu1 %443 }
 0x18f   : > { %v796_v6 = vadd.f32 %v795_v29, %v779_v11  ;;  %v820_v35 = vadd.f32 %v2828_v30, %v819_v33  ;;  %v1005_v27 = vmul.f32 2.0, %v2838_v28  ;;  %v1006_v32 = vmul.f32 2.0, %v2839_v22  ;;  %v2842_v11 = vld [vmem:[#allocation52_spill] sm:$0xff] }
 0x190   : > { %v636_v1 = vadd.f32 %v635_v40, %v634_v34  ;;  %v1021_v25 = vmul.f32 0.33333334, %v2546_v45  ;;  %v1022_v63 = vmul.f32 0.33333334, %v2550_v43  ;;  %v781_v42 = vmul.f32 %v2466_v0, %v765_v18  ;;  %v2846_v18 = vld [vmem:[#allocation31_spill] sm:$0xff]  ;;  %v2847_v33 = vld [vmem:[#allocation20_spill] sm:$0xff] }
 0x191   : > { %v797_v14 = vadd.f32 %v796_v6, %v780_v12  ;;  %v821_v3 = vadd.f32 %v2829_v54, %v820_v35  ;;  %v823_v30 = vsel %vm507_vm0, %v2505_v31, 0.0  ;;  %v799_v23 = vsel %vm507_vm0, %v782_v49, 0.0  ;;  %v2845_v31 = vld [vmem:[#allocation18_spill] sm:$0xff]  ;;  %v2848_v40 = vld [vmem:[#allocation32_spill] sm:$0xff] }
 0x192   : > { %637 = vadd.xlane.f32.xlu1 %v636_v1  ;;  %v2578_v47 = vadd.f32 %v2841_v37, %v2840_v39  ;;  %v1007_v41 = vmul.f32 2.0, %v2842_v11  ;;  %v1023_v58 = vmul.f32 0.33333334, %v2560_v5  ;;  %v2584_v60 = vadd.f32 %v2844_v13, %v2843_v16 }
 0x193   : > { %v798_v59 = vadd.f32 %v797_v14, %v781_v42  ;;  %v1008_v54 = vmul.f32 2.0, %v2290_v46  ;;  %v1024_v34 = vmul.f32 0.33333334, %v2565_v55  ;;  %v2590_v29 = vadd.f32 %v2846_v18, %v2845_v31 }
 0x194   : > { %v2594_v12 = vadd.f32 %v2848_v40, %v2847_v33  ;;  %v1037_v49 = vsub.f32 %v1005_v27, %v1021_v25  ;;  %v1038_v57 = vsub.f32 %v1006_v32, %v1022_v63  ;;  %v822_v6 = vadd.f32 %v2466_v0, %v821_v3 }
 0x195   : > { %v800_v1 = vadd.f32 %v799_v23, %v798_v59  ;;  %v1009_v35 = vmul.f32 2.0, %v2292_v19  ;;  %v1010_v46 = vmul.f32 2.0, %v2407_v21  ;;  %v1025_v61 = vmul.f32 0.33333334, %v2578_v47 }
 0x196   : > { %v1039_v50 = vsub.f32 %v1007_v41, %v1023_v58  ;;  %v1053_v28 = vmul.f32 %v2327_v8, %v1037_v49  ;;  %v1054_v22 = vmul.f32 %v2808_v36, %v1038_v57  ;;  %v1011_v42 = vmul.f32 2.0, %v2409_v62 }
 0x197   : > { %801 = vadd.xlane.f32.xlu1 %v800_v1  ;;  %v1012_v27 = vmul.f32 2.0, %v2411_v53  ;;  %v1026_v32 = vmul.f32 0.33333334, %v2584_v60  ;;  %v1040_v25 = vsub.f32 %v1008_v54, %v1024_v34  ;;  %vm453_vm9 = vcmp.eq.s32.totalorder %v2023_v38, %v444_v4 }
 0x198   : > { %v1055_v0 = vmul.f32 %v2441_v7, %v1039_v50  ;;  %v1071_v19 = vadd.f32 %v1054_v22, %v1053_v28  ;;  %vm454_vm10 = vcmp.eq.s32.totalorder %v2026_v51, %v444_v4  ;;  %v824_v21 = vadd.f32 %v823_v30, %v822_v6 }
 0x199   : > { %v1027_v8 = vmul.f32 0.33333334, %v2590_v29  ;;  %v1028_v36 = vmul.f32 0.33333334, %v2594_v12  ;;  %vm455_vm11 = vcmp.eq.s32.totalorder %v2029_v52, %v444_v4  ;;  %v1041_v62 = vsub.f32 %v1009_v35, %v1025_v61 }
 0x19a   : > { %v1056_v53 = vmul.f32 %v2453_v10, %v1040_v25  ;;  %v1072_v63 = vadd.f32 %v1071_v19, %v1055_v0  ;;  %v1270_v14 = vsel %vm453_vm9, 1.0, %v1589_v24  ;;  %vm456_vm12 = vcmp.eq.s32.totalorder %v2796_v2, %v444_v4 }
 0x19b   : > { %825 = vadd.xlane.f32.xlu1 %v824_v21  ;;  %v1271_v38 = vsel %vm454_vm10, 1.0, %v1589_v24  ;;  %v1042_v7 = vsub.f32 %v1010_v46, %v1026_v32  ;;  %v1057_v51 = vmul.f32 %v2460_v48, %v1041_v62  ;;  %v1272_v30 = vsel %vm455_vm11, 1.0, %v1589_v24 }
 0x19c   : > { %v1073_v3 = vadd.f32 %v1072_v63, %v1056_v53  ;;  %v1044_v23 = vsub.f32 %v1012_v27, %v1028_v36  ;;  %vm457_vm13 = vcmp.eq.s32.totalorder %v2797_v26, %v444_v4  ;;  %v967_v52 = vmul.f32 %v1270_v14, %v2546_v45 }
 0x19d   : > { %v968_v10 = vmul.f32 %v1271_v38, %v2550_v43  ;;  %v1043_v39 = vsub.f32 %v1011_v42, %v1027_v8  ;;  %v1058_v37 = vmul.f32 %v2473_v9, %v1042_v7  ;;  %v1273_v2 = vsel %vm456_vm12, 1.0, %v1589_v24 }
 0x19e   : > { %v1074_v11 = vadd.f32 %v1073_v3, %v1057_v51  ;;  %v1060_v41 = vmul.f32 %v2491_v17, %v1044_v23  ;;  %vm458_vm14 = vcmp.eq.s32.totalorder %v2799_v20, %v444_v4  ;;  %v969_v48 = vmul.f32 %v1272_v30, %v2560_v5 }
 0x19f   : > { %v985_v58 = vadd.f32 %v968_v10, %v967_v52  ;;  %v1059_v59 = vmul.f32 %v2486_v56, %v1043_v39  ;;  %vm460_vm15 = vcmp.eq.s32.totalorder %v2801_v44, %v444_v4  ;;  %v1274_v45 = vsel %vm457_vm13, 1.0, %v1589_v24 }
 0x1a0   : > { %v1075_v26 = vadd.f32 %v1074_v11, %v1058_v37  ;;  %vm459_vm1 = vcmp.eq.s32.totalorder %v2800_v15, %v444_v4  ;;  %v970_v9 = vmul.f32 %v1273_v2, %v2565_v55  ;;  %v1275_v17 = vsel %vm458_vm14, 1.0, %v1589_v24 }
 0x1a1   : > { %v986_v43 = vadd.f32 %v985_v58, %v969_v48  ;;  %v1077_v20 = vsel %vm507_vm0, %v1060_v41, 0.0  ;;  %v1277_v5 = vsel %vm460_vm15, 1.0, %v1589_v24  ;;  %v971_v13 = vmul.f32 %v1274_v45, %v2578_v47 }
 0x1a2   : > { %v1076_v16 = vadd.f32 %v1075_v26, %v1059_v59  ;;  %v1276_v44 = vsel %vm459_vm1, 1.0, %v1589_v24  ;;  %v972_v34 = vmul.f32 %v1275_v17, %v2584_v60  ;;  %v974_v15 = vmul.f32 %v1277_v5, %v2594_v12 }
 0x1a3   : > { %v987_v56 = vadd.f32 %v986_v43, %v970_v9  ;;  %v973_v55 = vmul.f32 %v1276_v44, %v2590_v29  ;;  %v2849_v46 = vlaneseq  ;;  %v497_v50 = vstv %s1278_s11 }
 0x1a4   : > { %v1078_v54 = vadd.f32 %v1077_v20, %v1076_v16  ;;  %v991_v40 = vsel %vm507_vm0, %v974_v15, 0.0  ;;  %vm1093_vm0 = vcmask 7168   ;;  %vm1098_vm4 = vcmask 15368  }
 0x1a5   : > { %v988_v31 = vadd.f32 %v987_v56, %v971_v13  ;;  %v495_v61 = vshrl.u32 %v2849_v46, 7 }
 0x1a6   : > { %1079 = vadd.xlane.f32.xlu1 %v1078_v54 }
 0x1a7   : > { %v989_v18 = vadd.f32 %v988_v31, %v972_v34  ;;  %v498_v32 = vadd.s32 %v497_v50, %v495_v61  ;;  %v496_v10 = vadd.s32 8, %v495_v61 }
 0x1a9   : > { %v990_v33 = vadd.f32 %v989_v18, %v973_v55  ;;  %vm500_vm2 = vcmp.lt.s32.totalorder %v498_v32, 20  ;;  %v499_v16 = vadd.s32 %v497_v50, %v496_v10 }
 0x1ab   : > { %v992_v49 = vadd.f32 %v991_v40, %v990_v33  ;;  %vm501_vm3 = vcmp.lt.s32.totalorder %v499_v16, 20 }
 0x1ad   : > { %993 = vadd.xlane.f32.xlu1 %v992_v49 }
 0x1e6   : > { %v652_v60 = vpop.xlane.xlu0 %651 }
 0x1ec   : > { %v816_v12 = vpop.xlane.xlu0 %815 }
 0x1f6   : > { %v924_v47 = vpop.xlane.xlu1 %923 }
 0x1fa   : > { %v662_v57 = vpop.xlane.xlu1 %661 }
 0x1fd   : > { %v1070_v35 = vpop.xlane.xlu0 %1069 }
 0x208   : > { %v984_v0 = vpop.xlane.xlu0 %983 }
 0x212   : > { %v934_v24 = vpop.xlane.xlu1 %933 }
 0x216   : > { %v628_v4 = vpop.xlane.xlu1 %627 }
 0x217   : > { %1431 = vlog2.f32 %v628_v4 }
 0x21a   : > { %v792_v1 = vpop.xlane.xlu1 %791 }
 0x21b   : > { %1433 = vlog2.f32 %v792_v1 }
 0x21c   : > { %1435 = vlog2.f32 %v652_v60 }
 0x21d   : > { %1437 = vrcp.f32 %v924_v47 }
 0x21e   : > { %1439 = vlog2.f32 %v816_v12 }
 0x21f   : > { %v638_v6 = vpop.xlane.xlu1 %637  ;;  %1441 = vlog2.f32 %v924_v47 }
 0x220   : > { %1443 = vlog2.f32 %v662_v57 }
 0x221   : > { %v1432_v29 = vpop.eup %1431  ;;  %1445 = vlog2.f32 %v934_v24 }
 0x222   : > { %v640_v22 = vmul.f32 0.6931472, %v1432_v29 }
 0x224   : > { %v802_v27 = vpop.xlane.xlu1 %801 }
 0x225   : > { %v1434_v28 = vpop.eup %1433  ;;  %1447 = vlog2.f32 %v802_v27 }
 0x226   : > { %v804_v42 = vmul.f32 0.6931472, %v1434_v28  ;;  %1449 = vrcp.f32 %v934_v24  ;;  %v1436_v8 = vpop.eup %1435 }
 0x227   : > { %1451 = vlog2.f32 %v638_v6  ;;  %v1438_v62 = vpop.eup %1437  ;;  %v664_v3 = vmul.f32 0.6931472, %v1436_v8 }
 0x228   : > { %v957_v25 = vadd.f32 %v804_v42, %v640_v22  ;;  %v826_v21 = vpop.xlane.xlu1 %825  ;;  %v1440_v53 = vpop.eup %1439  ;;  %v1081_v38 = vmul.f32 %v1438_v62, %v1070_v35 }
 0x229   : > { %1453 = vlog2.f32 %v826_v21  ;;  %v1442_v63 = vpop.eup %1441  ;;  %v828_v37 = vmul.f32 0.6931472, %v1440_v53 }
 0x22a   : > { %v995_v19 = vsub.f32 %v957_v25, %v984_v0  ;;  %v1444_v14 = vpop.eup %1443  ;;  %v1083_v52 = vadd.f32 %v1081_v38, %v664_v3  ;;  %v936_v11 = vmul.f32 0.6931472, %v1442_v63 }
 0x22b   : > { %v1446_v7 = vpop.eup %1445  ;;  %v666_v48 = vmul.f32 0.6931472, %v1444_v14 }
 0x22c   : > { %v1091_v36 = vsel %vm500_vm2, %v995_v19, 0.0  ;;  %v938_v58 = vmul.f32 0.6931472, %v1446_v7  ;;  %v1085_v9 = vadd.f32 %v1083_v52, %v828_v37  ;;  %v1087_v20 = vmul.f32 2.0, %v936_v11 }
 0x22d   : > { %1094 = vst.msk [vmem:[%s2646_s5] sm:$0xff] %vm1093_vm0, %v1091_v36 }
 0x22e   : > { %v1088_v5 = vmul.f32 2.0, %v938_v58  ;;  %v1089_v56 = vsub.f32 %v1085_v9, %v1087_v20 }
 0x22f   : > { %v1448_v51 = vpop.eup %1447 }
 0x230   : > { %v1450_v30 = vpop.eup %1449  ;;  %v806_v2 = vmul.f32 0.6931472, %v1448_v51  ;;  %v1096_v55 = vsel %vm500_vm2, %v1089_v56, 0.0 }
 0x231   : > { %v1452_v23 = vpop.eup %1451  ;;  %1099 = vst.msk [vmem:[%s2646_s5] sm:$0xff] %vm1098_vm4, %v1096_v55 }
 0x232   : > { %v642_v45 = vmul.f32 0.6931472, %v1452_v23 }
 0x233   : > { %v1454_v39 = vpop.eup %1453  ;;  %v1080_v41 = vpop.xlane.xlu1 %1079 }
 0x234   : > { %v830_v59 = vmul.f32 0.6931472, %v1454_v39  ;;  %v1082_v26 = vmul.f32 %v1450_v30, %v1080_v41  ;;  %v958_v17 = vadd.f32 %v806_v2, %v642_v45 }
 0x236   : > { %v1084_v43 = vadd.f32 %v1082_v26, %v666_v48 }
 0x238   : > { %v1086_v13 = vadd.f32 %v1084_v43, %v830_v59 }
 0x23a   : > { %v1090_v54 = vsub.f32 %v1086_v13, %v1088_v5  ;;  %v994_v44 = vpop.xlane.xlu1 %993 }
 0x23b   : > { %v996_v34 = vsub.f32 %v958_v17, %v994_v44 }
 0x23c   : > { %v1097_v31 = vsel %vm501_vm3, %v1090_v54, 0.0 }
 0x23d   : > { %v1092_v15 = vsel %vm501_vm3, %v996_v34, 0.0 }
 0x23e   : > { %1095 = vst.msk [vmem:[%s2646_s5 + $0x8] sm:$0xff] %vm1093_vm0, %v1092_v15 }
 0x23f   : > { %1100 = vst.msk [vmem:[%s2646_s5 + $0x8] sm:$0xff] %vm1098_vm4, %v1097_v31 }
 0x240 PF: > { %p17_p3 = scmp.ge.s32.totalorder %s1637_s20, 4   ;;  %s2850_s15 = smov %s1569_s16 }
 0x241   : > { %s2851_s16 = smov %s1573_s17  ;;  %s2852_s17 = smov %s1647_s23 }
 0x242   : > { %s2853_s18 = smov %s1637_s20  ;;  %19 = sbr.rel (!%p17_p3) target bundleno = 5 (0x5), region = 103 }
 0x249   :  { %1123 = vsyncpa [#allocation3], 1 }
 0x24a   :  { %1125 = vsyncpa [#allocation3 + $0x1], 1 }
 0x24b   :  { %1126 = vsyncpa [#allocation5], 1 }
 0x24c   :  { %1128 = vsyncpa [#allocation5 + $0x1], 1 }

</bundles_post_ra>
